<compile_context>
chip_gen: v5e
topology: v5e:2x2
jax: 0.10.0
libtpu: 0.0.40
codegen_flags: <defaults>
</compile_context>

<pallas_src>
import functools

import jax
import jax.numpy as jnp
import numpy as np
from jax.experimental import pallas as pl
from jax.experimental.pallas import tpu as pltpu


def _round_up(x, m):
    return (x + m - 1) // m * m


def _classify_kernel(idx_ref, wconv_ref, conv_b_ref, tmask_ref,
                     hw_w_ref, hw_b_ref, lin_w_ref, lin_b_ref, out_ref):
    f_max, Bt, L = idx_ref.shape                 # int32 combined im2col indices
    K_pad, S_pad = wconv_ref.shape

    # --- one-hot im2col over token ids (fused embedding gather + conv taps) --
    # idx already carries the j*Vp offset, so each tap hits a disjoint K range.
    kio = jax.lax.broadcasted_iota(jnp.int32, (Bt, L, K_pad), 2)
    x_oh = jnp.zeros((Bt, L, K_pad), jnp.float32)
    for j in range(f_max):                       # trace-time unrolled (f_max small)
        x_oh = x_oh + jnp.where(kio == idx_ref[j][:, :, None], 1.0, 0.0)

    # --- all filter groups + embedding lookup as ONE lane-dense MXU matmul ---
    acc = jnp.dot(x_oh.reshape(Bt * L, K_pad).astype(jnp.bfloat16),
                  wconv_ref[...], preferred_element_type=jnp.float32)
    acc = acc.reshape(Bt, L, S_pad)
    # bias + ReLU; zero out invalid time positions (constant mask; post-ReLU
    # values are >= 0 so masking to 0 preserves the max), then max-pool.
    acc = jnp.maximum(acc + conv_b_ref[...], 0.0) * tmask_ref[...]
    pred = jnp.max(acc, axis=1)                  # (Bt, S_pad) f32, padded lanes 0

    # --- highway layer (exact sigmoid, per review) ----------------------------
    hw = jnp.dot(pred.astype(jnp.bfloat16), hw_w_ref[...],
                 preferred_element_type=jnp.float32) + hw_b_ref[...]
    sig = 1.0 / (1.0 + jnp.exp(-hw))
    pred = sig * jnp.maximum(hw, 0.0) + (1.0 - sig) * pred

    # TODO(synk): dropout is identity here (eval mode); no RNG-based masking.

    # --- output linear + softmax (padded class lanes have -1e30 bias) --------
    logit = jnp.dot(pred.astype(jnp.bfloat16), lin_w_ref[...],
                    preferred_element_type=jnp.float32) + lin_b_ref[...]
    m = jnp.max(logit, axis=1, keepdims=True)    # max over real classes only
    e = jnp.exp(logit - m)                       # padded lanes underflow to 0
    out_ref[...] = e / jnp.sum(e, axis=1, keepdims=True)   # exact divide


def init_params(key, num_classes, vocab_size, emb_dim, filter_sizes, num_filters):
    """All parameters ~ U(-0.05, 0.05), mirroring Classify.init_parameters()."""
    S = sum(num_filters)

    def u(k, shape):
        return jax.random.uniform(k, shape, jnp.float32, -0.05, 0.05)

    keys = jax.random.split(key, 2 * len(filter_sizes) + 5)
    ki = 0
    params = {}
    params["emb"] = u(keys[ki], (vocab_size, emb_dim)); ki += 1
    for i, (f, n) in enumerate(zip(filter_sizes, num_filters)):
        # stored pre-transposed for the kernel/ref: (f, E, n)
        params[f"conv{i}_w"] = u(keys[ki], (f, emb_dim, n)); ki += 1
        params[f"conv{i}_b"] = u(keys[ki], (1, n)); ki += 1
    params["hw_w"] = u(keys[ki], (S, S)); ki += 1
    params["hw_b"] = u(keys[ki], (1, S)); ki += 1
    params["lin_w"] = u(keys[ki], (S, num_classes)); ki += 1
    params["lin_b"] = u(keys[ki], (1, num_classes)); ki += 1
    return params


def classify_forward(x, params, filter_sizes, num_filters, *, b_tile=None):
    filter_sizes = tuple(filter_sizes)
    num_filters = tuple(num_filters)
    V, E = params["emb"].shape
    S = sum(num_filters)
    C = params["lin_w"].shape[1]
    f_max = max(filter_sizes)
    Vp = V + 1                              # +1 sentinel (zero) row for OOB taps
    S_pad = _round_up(S, 128)
    C_pad = _round_up(C, 128)
    K = f_max * Vp
    K_pad = _round_up(K, 8)
    B, L = x.shape

    # --- batch tile: fill MXU rows, keep >=2 grid steps for v7x's 2 TCs ------
    B8 = _round_up(B, 8)
    if b_tile is None:
        b_tile = 8
        for t in (16, 32, 64, 128):
            if B8 >= 2 * t:
                b_tile = t
    B_pad = _round_up(B, b_tile)
    grid = (B_pad // b_tile,)

    # --- fold the embedding table into the fused, lane-padded conv weight ----
    # TODO(synk): the one-hot fusion assumes a small vocab (K = f_max*(V+1)
    # lanes); for large vocab keep the gather in the wrapper or DMA-gather.
    conv_w = jnp.zeros((f_max, E, S_pad), jnp.float32)
    conv_b = jnp.zeros((1, S_pad), jnp.float32)
    off = 0
    for i, (f, n) in enumerate(zip(filter_sizes, num_filters)):
        conv_w = conv_w.at[:f, :, off:off + n].set(params[f"conv{i}_w"])
        conv_b = conv_b.at[:, off:off + n].set(params[f"conv{i}_b"])
        off += n
    wconv = jnp.einsum("ve,jes->jvs", params["emb"], conv_w)     # (f_max,V,S_pad)
    wconv = jnp.pad(wconv, ((0, 0), (0, 1), (0, 0)))             # zero sentinel row
    wconv = wconv.reshape(K, S_pad)
    wconv = jnp.pad(wconv, ((0, K_pad - K), (0, 0))).astype(jnp.bfloat16)

    hw_w = (jnp.zeros((S_pad, S_pad), jnp.float32)
            .at[:S, :S].set(params["hw_w"]).astype(jnp.bfloat16))
    hw_b = jnp.zeros((1, S_pad), jnp.float32).at[:, :S].set(params["hw_b"])
    lin_w = (jnp.zeros((S_pad, C_pad), jnp.float32)
             .at[:S, :C].set(params["lin_w"]).astype(jnp.bfloat16))
    # Padded class lanes get a huge negative bias -> softmax ignores them.
    lin_b = jnp.full((1, C_pad), -1e30, jnp.float32).at[:, :C].set(params["lin_b"])

    # --- constant time-validity mask (valid length L-f+1 per filter group) ---
    tmask_np = np.zeros((L, S_pad), np.float32)
    off = 0
    for f, n in zip(filter_sizes, num_filters):
        tmask_np[:L - f + 1, off:off + n] = 1.0
        off += n
    tmask = jnp.asarray(tmask_np)

    # --- im2col on the token ids (int32 only; no (B,L,E) HBM round trip) -----
    # idx[j, b, t] = j*Vp + x[b, t+j]  (sentinel j*Vp + V when t+j >= L)
    idx = jnp.stack(
        [jnp.pad(x[:, j:], ((0, 0), (0, j)), constant_values=V) + j * Vp
         for j in range(f_max)], axis=0).astype(jnp.int32)      # (f_max, B, L)
    # Batch padding with value V hits a zero weight row -> harmless, discarded.
    idx = jnp.pad(idx, ((0, 0), (0, B_pad - B), (0, 0)), constant_values=V)

    flops = 2 * B_pad * (L * K_pad * S_pad + S_pad * S_pad + S_pad * C_pad)
    bytes_accessed = (idx.size * 4 + wconv.size * 2 + hw_w.size * 2 +
                      lin_w.size * 2 +
                      (conv_b.size + hw_b.size + lin_b.size + tmask.size) * 4 +
                      B_pad * C_pad * 4)

    out = pl.pallas_call(
        _classify_kernel,
        out_shape=jax.ShapeDtypeStruct((B_pad, C_pad), jnp.float32),
        grid_spec=pltpu.PrefetchScalarGridSpec(
            num_scalar_prefetch=0,
            grid=grid,
            in_specs=[
                pl.BlockSpec((f_max, b_tile, L), lambda i: (0, i, 0)),  # ids im2col
                pl.BlockSpec((K_pad, S_pad), lambda i: (0, 0)),   # fused emb+conv W
                pl.BlockSpec((1, S_pad), lambda i: (0, 0)),       # fused conv b
                pl.BlockSpec((L, S_pad), lambda i: (0, 0)),       # time mask
                pl.BlockSpec((S_pad, S_pad), lambda i: (0, 0)),   # highway W
                pl.BlockSpec((1, S_pad), lambda i: (0, 0)),       # highway b
                pl.BlockSpec((S_pad, C_pad), lambda i: (0, 0)),   # lin W
                pl.BlockSpec((1, C_pad), lambda i: (0, 0)),       # lin b
            ],
            out_specs=pl.BlockSpec((b_tile, C_pad), lambda i: (i, 0)),
        ),
        compiler_params=pltpu.CompilerParams(
            dimension_semantics=("parallel",),
            vmem_limit_bytes=32 * 1024 * 1024),   # per-tile footprint ~1 MiB
        cost_estimate=pl.CostEstimate(
            flops=flops,
            transcendentals=B_pad * (S_pad + C_pad),
            bytes_accessed=bytes_accessed),
    )(idx, wconv, conv_b, tmask, hw_w, hw_b, lin_w, lin_b)

    return out[:B, :C]


def classify_ref(x, params, filter_sizes, num_filters):
    """Pure-JAX f32 reference of the original module's math."""
    emb = jnp.take(params["emb"], x, axis=0).astype(jnp.float32)
    B, L, _ = emb.shape
    pools = []
    for i, (f, n) in enumerate(zip(filter_sizes, num_filters)):
        T = L - f + 1
        w = params[f"conv{i}_w"]
        acc = jnp.zeros((B, T, n), jnp.float32)
        for j in range(f):
            acc = acc + jnp.einsum("bte,en->btn", emb[:, j:j + T, :], w[j])
        acc = jnp.maximum(acc + params[f"conv{i}_b"][None, :, :], 0.0)
        pools.append(jnp.max(acc, axis=1))
    pred = jnp.concatenate(pools, axis=1)
    hw = pred @ params["hw_w"] + params["hw_b"]
    sig = jax.nn.sigmoid(hw)
    pred = sig * jnp.maximum(hw, 0.0) + (1.0 - sig) * pred
    logit = pred @ params["lin_w"] + params["lin_b"]
    return jax.nn.softmax(logit, axis=1)


if __name__ == "__main__":
    # Small config consistent with the module's forward.
    num_classes = 4
    vocab_size = 16
    emb_dim = 32
    filter_sizes = (2, 3)
    num_filters = (8, 8)
    batch, seq_len = 32, 8      # auto-picks b_tile=16 -> grid of 2 "parallel" steps

    key = jax.random.PRNGKey(0)
    k_param, k_x = jax.random.split(key)
    params = init_params(k_param, num_classes, vocab_size, emb_dim,
                         filter_sizes, num_filters)
    x = jax.random.randint(k_x, (batch, seq_len), 0, vocab_size, jnp.int32)

    out = classify_forward(x, params, filter_sizes, num_filters)
    out = jax.block_until_ready(out)

    ref = jax.block_until_ready(classify_ref(x, params, filter_sizes, num_filters))
    assert out.shape == (batch, num_classes)
    out_np, ref_np = np.asarray(out), np.asarray(ref)
    err = float(np.max(np.abs(out_np - ref_np)))
    # bf16 MXU operands (f32 accumulation, exact divides) -> small tolerance.
    assert np.allclose(out_np, ref_np, atol=2e-3, rtol=2e-3), err
    assert np.allclose(out_np.sum(axis=1), 1.0, atol=1e-3)

    print("KERNEL_OK")
</pallas_src>

<mosaic_0001>
module attributes {stable_mosaic.version = 11 : i64} {
  func.func @_classify_kernel(%arg0: i32, %arg1: memref<3x16x8xi32, #tpu.memory_space<vmem>>, %arg2: memref<56x128xbf16, #tpu.memory_space<vmem>>, %arg3: memref<1x128xf32, #tpu.memory_space<vmem>>, %arg4: memref<8x128xf32, #tpu.memory_space<vmem>>, %arg5: memref<128x128xbf16, #tpu.memory_space<vmem>>, %arg6: memref<1x128xf32, #tpu.memory_space<vmem>>, %arg7: memref<128x128xbf16, #tpu.memory_space<vmem>>, %arg8: memref<1x128xf32, #tpu.memory_space<vmem>>, %arg9: memref<16x128xf32, #tpu.memory_space<vmem>>) attributes {dimension_semantics = [#tpu.dimension_semantics<parallel>], iteration_bounds = array<i64: 2>, scalar_prefetch = 0 : i64, scratch_operands = 0 : i64, tpu.core_type = #tpu.core_type<tc>, window_params = [{transform_indices = @transform_0, window_bounds = array<i64: 3, 16, 8>}, {pipeline_mode = #tpu.pipeline_mode<synchronous>, transform_indices = @transform_1, window_bounds = array<i64: 56, 128>}, {pipeline_mode = #tpu.pipeline_mode<synchronous>, transform_indices = @transform_2, window_bounds = array<i64: 1, 128>}, {pipeline_mode = #tpu.pipeline_mode<synchronous>, transform_indices = @transform_3, window_bounds = array<i64: 8, 128>}, {pipeline_mode = #tpu.pipeline_mode<synchronous>, transform_indices = @transform_4, window_bounds = array<i64: 128, 128>}, {pipeline_mode = #tpu.pipeline_mode<synchronous>, transform_indices = @transform_5, window_bounds = array<i64: 1, 128>}, {pipeline_mode = #tpu.pipeline_mode<synchronous>, transform_indices = @transform_6, window_bounds = array<i64: 128, 128>}, {pipeline_mode = #tpu.pipeline_mode<synchronous>, transform_indices = @transform_7, window_bounds = array<i64: 1, 128>}, {transform_indices = @transform_8, window_bounds = array<i64: 16, 128>}]} {
    %0 = tpu.iota {dimensions = array<i32: 2>} : vector<16x8x56xi32>
    %cst = arith.constant 0.000000e+00 : f32
    %1 = vector.broadcast %cst : f32 to vector<16x8x56xf32>
    %c0 = arith.constant 0 : index
    %c0_0 = arith.constant 0 : index
    %c0_1 = arith.constant 0 : index
    %2 = vector.load %arg1[%c0, %c0_0, %c0_1] : memref<3x16x8xi32, #tpu.memory_space<vmem>>, vector<1x16x8xi32>
    %3 = vector.shape_cast %2 : vector<1x16x8xi32> to vector<16x8xi32>
    %4 = vector.shape_cast %3 : vector<16x8xi32> to vector<16x8x1xi32>
    %5 = vector.broadcast %4 : vector<16x8x1xi32> to vector<16x8x56xi32>
    %6 = arith.cmpi eq, %0, %5 : vector<16x8x56xi32>
    %cst_2 = arith.constant 1.000000e+00 : f32
    %cst_3 = arith.constant 0.000000e+00 : f32
    %7 = vector.broadcast %cst_2 : f32 to vector<16x8x56xf32>
    %8 = vector.broadcast %cst_3 : f32 to vector<16x8x56xf32>
    %9 = arith.select %6, %7, %8 : vector<16x8x56xi1>, vector<16x8x56xf32>
    %10 = arith.addf %1, %9 : vector<16x8x56xf32>
    %c1 = arith.constant 1 : index
    %c0_4 = arith.constant 0 : index
    %c0_5 = arith.constant 0 : index
    %11 = vector.load %arg1[%c1, %c0_4, %c0_5] : memref<3x16x8xi32, #tpu.memory_space<vmem>>, vector<1x16x8xi32>
    %12 = vector.shape_cast %11 : vector<1x16x8xi32> to vector<16x8xi32>
    %13 = vector.shape_cast %12 : vector<16x8xi32> to vector<16x8x1xi32>
    %14 = vector.broadcast %13 : vector<16x8x1xi32> to vector<16x8x56xi32>
    %15 = arith.cmpi eq, %0, %14 : vector<16x8x56xi32>
    %cst_6 = arith.constant 1.000000e+00 : f32
    %cst_7 = arith.constant 0.000000e+00 : f32
    %16 = vector.broadcast %cst_6 : f32 to vector<16x8x56xf32>
    %17 = vector.broadcast %cst_7 : f32 to vector<16x8x56xf32>
    %18 = arith.select %15, %16, %17 : vector<16x8x56xi1>, vector<16x8x56xf32>
    %19 = arith.addf %10, %18 : vector<16x8x56xf32>
    %c2 = arith.constant 2 : index
    %c0_8 = arith.constant 0 : index
    %c0_9 = arith.constant 0 : index
    %20 = vector.load %arg1[%c2, %c0_8, %c0_9] : memref<3x16x8xi32, #tpu.memory_space<vmem>>, vector<1x16x8xi32>
    %21 = vector.shape_cast %20 : vector<1x16x8xi32> to vector<16x8xi32>
    %22 = vector.shape_cast %21 : vector<16x8xi32> to vector<16x8x1xi32>
    %23 = vector.broadcast %22 : vector<16x8x1xi32> to vector<16x8x56xi32>
    %24 = arith.cmpi eq, %0, %23 : vector<16x8x56xi32>
    %cst_10 = arith.constant 1.000000e+00 : f32
    %cst_11 = arith.constant 0.000000e+00 : f32
    %25 = vector.broadcast %cst_10 : f32 to vector<16x8x56xf32>
    %26 = vector.broadcast %cst_11 : f32 to vector<16x8x56xf32>
    %27 = arith.select %24, %25, %26 : vector<16x8x56xi1>, vector<16x8x56xf32>
    %28 = arith.addf %19, %27 : vector<16x8x56xf32>
    %29 = vector.shape_cast %28 : vector<16x8x56xf32> to vector<128x56xf32>
    %30 = arith.truncf %29 : vector<128x56xf32> to vector<128x56xbf16>
    %c0_12 = arith.constant 0 : index
    %c0_13 = arith.constant 0 : index
    %31 = vector.load %arg2[%c0_12, %c0_13] : memref<56x128xbf16, #tpu.memory_space<vmem>>, vector<56x128xbf16>
    %cst_14 = arith.constant dense<0.000000e+00> : vector<128x128xf32>
    %32 = tpu.matmul %30, %31, %cst_14 {dimension_numbers = #tpu.dot_dimension_numbers<[1], [0], [0], [1], [0, 0, 1, 1], [], []>} : vector<128x56xbf16>, vector<56x128xbf16>, vector<128x128xf32> -> vector<128x128xf32>
    %33 = vector.shape_cast %32 : vector<128x128xf32> to vector<16x8x128xf32>
    %c0_15 = arith.constant 0 : index
    %c0_16 = arith.constant 0 : index
    %34 = vector.load %arg3[%c0_15, %c0_16] : memref<1x128xf32, #tpu.memory_space<vmem>>, vector<1x128xf32>
    %35 = vector.shape_cast %34 : vector<1x128xf32> to vector<1x1x128xf32>
    %36 = vector.broadcast %35 : vector<1x1x128xf32> to vector<16x8x128xf32>
    %37 = arith.addf %33, %36 : vector<16x8x128xf32>
    %cst_17 = arith.constant 0.000000e+00 : f32
    %38 = vector.broadcast %cst_17 : f32 to vector<16x8x128xf32>
    %39 = arith.maximumf %37, %38 : vector<16x8x128xf32>
    %c0_18 = arith.constant 0 : index
    %c0_19 = arith.constant 0 : index
    %40 = vector.load %arg4[%c0_18, %c0_19] : memref<8x128xf32, #tpu.memory_space<vmem>>, vector<8x128xf32>
    %41 = vector.shape_cast %40 : vector<8x128xf32> to vector<1x8x128xf32>
    %42 = vector.broadcast %41 : vector<1x8x128xf32> to vector<16x8x128xf32>
    %43 = arith.mulf %39, %42 : vector<16x8x128xf32>
    %cst_20 = arith.constant dense<0xFF800000> : vector<16x128xf32>
    %44 = vector.multi_reduction <maximumf>, %43, %cst_20 [1] : vector<16x8x128xf32> to vector<16x128xf32>
    %45 = arith.truncf %44 : vector<16x128xf32> to vector<16x128xbf16>
    %c0_21 = arith.constant 0 : index
    %c0_22 = arith.constant 0 : index
    %46 = vector.load %arg5[%c0_21, %c0_22] : memref<128x128xbf16, #tpu.memory_space<vmem>>, vector<128x128xbf16>
    %cst_23 = arith.constant dense<0.000000e+00> : vector<16x128xf32>
    %47 = tpu.matmul %45, %46, %cst_23 {dimension_numbers = #tpu.dot_dimension_numbers<[1], [0], [0], [1], [0, 0, 1, 1], [], []>} : vector<16x128xbf16>, vector<128x128xbf16>, vector<16x128xf32> -> vector<16x128xf32>
    %c0_24 = arith.constant 0 : index
    %c0_25 = arith.constant 0 : index
    %48 = vector.load %arg6[%c0_24, %c0_25] : memref<1x128xf32, #tpu.memory_space<vmem>>, vector<1x128xf32>
    %49 = vector.broadcast %48 : vector<1x128xf32> to vector<16x128xf32>
    %50 = arith.addf %47, %49 : vector<16x128xf32>
    %cst_26 = arith.constant 0.000000e+00 : f32
    %51 = vector.broadcast %cst_26 : f32 to vector<16x128xf32>
    %52 = arith.subf %51, %50 : vector<16x128xf32>
    %53 = math.exp %52 : vector<16x128xf32>
    %cst_27 = arith.constant 1.000000e+00 : f32
    %54 = vector.broadcast %cst_27 : f32 to vector<16x128xf32>
    %55 = arith.addf %54, %53 : vector<16x128xf32>
    %cst_28 = arith.constant 1.000000e+00 : f32
    %56 = vector.broadcast %cst_28 : f32 to vector<16x128xf32>
    %57 = arith.divf %56, %55 : vector<16x128xf32>
    %cst_29 = arith.constant 0.000000e+00 : f32
    %58 = vector.broadcast %cst_29 : f32 to vector<16x128xf32>
    %59 = arith.maximumf %50, %58 : vector<16x128xf32>
    %60 = arith.mulf %57, %59 : vector<16x128xf32>
    %cst_30 = arith.constant 1.000000e+00 : f32
    %61 = vector.broadcast %cst_30 : f32 to vector<16x128xf32>
    %62 = arith.subf %61, %57 : vector<16x128xf32>
    %63 = arith.mulf %62, %44 : vector<16x128xf32>
    %64 = arith.addf %60, %63 : vector<16x128xf32>
    %65 = arith.truncf %64 : vector<16x128xf32> to vector<16x128xbf16>
    %c0_31 = arith.constant 0 : index
    %c0_32 = arith.constant 0 : index
    %66 = vector.load %arg7[%c0_31, %c0_32] : memref<128x128xbf16, #tpu.memory_space<vmem>>, vector<128x128xbf16>
    %cst_33 = arith.constant dense<0.000000e+00> : vector<16x128xf32>
    %67 = tpu.matmul %65, %66, %cst_33 {dimension_numbers = #tpu.dot_dimension_numbers<[1], [0], [0], [1], [0, 0, 1, 1], [], []>} : vector<16x128xbf16>, vector<128x128xbf16>, vector<16x128xf32> -> vector<16x128xf32>
    %c0_34 = arith.constant 0 : index
    %c0_35 = arith.constant 0 : index
    %68 = vector.load %arg8[%c0_34, %c0_35] : memref<1x128xf32, #tpu.memory_space<vmem>>, vector<1x128xf32>
    %69 = vector.broadcast %68 : vector<1x128xf32> to vector<16x128xf32>
    %70 = arith.addf %67, %69 : vector<16x128xf32>
    %cst_36 = arith.constant dense<0xFF800000> : vector<16xf32>
    %71 = vector.multi_reduction <maximumf>, %70, %cst_36 [1] : vector<16x128xf32> to vector<16xf32>
    %72 = vector.shape_cast %71 : vector<16xf32> to vector<16x1xf32>
    %73 = vector.broadcast %72 : vector<16x1xf32> to vector<16x128xf32>
    %74 = arith.subf %70, %73 : vector<16x128xf32>
    %75 = math.exp %74 : vector<16x128xf32>
    %cst_37 = arith.constant dense<0.000000e+00> : vector<16xf32>
    %76 = vector.multi_reduction <add>, %75, %cst_37 [1] : vector<16x128xf32> to vector<16xf32>
    %77 = vector.shape_cast %76 : vector<16xf32> to vector<16x1xf32>
    %78 = vector.broadcast %77 : vector<16x1xf32> to vector<16x128xf32>
    %79 = arith.divf %75, %78 : vector<16x128xf32>
    %c0_38 = arith.constant 0 : index
    %c0_39 = arith.constant 0 : index
    %80 = vector.load %arg9[%c0_38, %c0_39] : memref<16x128xf32, #tpu.memory_space<vmem>>, vector<16x128xf32>
    tpu.vector_store %arg9[%c0_38, %c0_39], %79 {strides = array<i32>} : memref<16x128xf32, #tpu.memory_space<vmem>>, vector<16x128xf32>,
    return
  }
  func.func @transform_0(%arg0: i32) -> (i32, i32, i32) {
    %c0_i32 = arith.constant 0 : i32
    %c0_i32_0 = arith.constant 0 : i32
    %c0_i32_1 = arith.constant 0 : i32
    return %c0_i32, %arg0, %c0_i32_0 : i32, i32, i32
  }
  func.func @transform_1(%arg0: i32) -> (i32, i32) {
    %c0_i32 = arith.constant 0 : i32
    %c0_i32_0 = arith.constant 0 : i32
    %c0_i32_1 = arith.constant 0 : i32
    return %c0_i32, %c0_i32_0 : i32, i32
  }
  func.func @transform_2(%arg0: i32) -> (i32, i32) {
    %c0_i32 = arith.constant 0 : i32
    %c0_i32_0 = arith.constant 0 : i32
    %c0_i32_1 = arith.constant 0 : i32
    return %c0_i32, %c0_i32_0 : i32, i32
  }
  func.func @transform_3(%arg0: i32) -> (i32, i32) {
    %c0_i32 = arith.constant 0 : i32
    %c0_i32_0 = arith.constant 0 : i32
    %c0_i32_1 = arith.constant 0 : i32
    return %c0_i32, %c0_i32_0 : i32, i32
  }
  func.func @transform_4(%arg0: i32) -> (i32, i32) {
    %c0_i32 = arith.constant 0 : i32
    %c0_i32_0 = arith.constant 0 : i32
    %c0_i32_1 = arith.constant 0 : i32
    return %c0_i32, %c0_i32_0 : i32, i32
  }
  func.func @transform_5(%arg0: i32) -> (i32, i32) {
    %c0_i32 = arith.constant 0 : i32
    %c0_i32_0 = arith.constant 0 : i32
    %c0_i32_1 = arith.constant 0 : i32
    return %c0_i32, %c0_i32_0 : i32, i32
  }
  func.func @transform_6(%arg0: i32) -> (i32, i32) {
    %c0_i32 = arith.constant 0 : i32
    %c0_i32_0 = arith.constant 0 : i32
    %c0_i32_1 = arith.constant 0 : i32
    return %c0_i32, %c0_i32_0 : i32, i32
  }
  func.func @transform_7(%arg0: i32) -> (i32, i32) {
    %c0_i32 = arith.constant 0 : i32
    %c0_i32_0 = arith.constant 0 : i32
    %c0_i32_1 = arith.constant 0 : i32
    return %c0_i32, %c0_i32_0 : i32, i32
  }
  func.func @transform_8(%arg0: i32) -> (i32, i32) {
    %c0_i32 = arith.constant 0 : i32
    %c0_i32_0 = arith.constant 0 : i32
    return %arg0, %c0_i32 : i32, i32
  }
}

</mosaic_0001>

<bundles_post_ra>
// kernel: tpu_custom_call.1
= control target key start
LH: loop header
LB: loop body
LE: loop exit
PB: predicated region body
PF: predicated region fallthrough
CT: control target
= control target key end

     0   :  { %13 = vsyncpa [#allocation4], 0  ;;  %s2394_s0 = inlined_call_operand.vmem [shape: s32[3,32,8], index: 0, kind: input, shape index: {}]   ;;  %s2395_s1 = inlined_call_operand.vmem [shape: bf16[56,128], index: 1, kind: input, shape index: {}]   ;;  %s2396_s2 = inlined_call_operand.vmem [shape: f32[1,128], index: 2, kind: input, shape index: {}]   ;;  %s2397_s3 = inlined_call_operand.vmem [shape: f32[8,128], index: 3, kind: input, shape index: {}]   ;;  %s2398_s4 = inlined_call_operand.vmem [shape: bf16[128,128], index: 4, kind: input, shape index: {}]   ;;  %s2399_s5 = inlined_call_operand.vmem [shape: f32[1,128], index: 5, kind: input, shape index: {}]   ;;  %s2400_s6 = inlined_call_operand.hbm [shape: bf16[128,128], index: 6, kind: input, shape index: {}]   ;;  %s2401_s7 = inlined_call_operand.vmem [shape: f32[1,128], index: 7, kind: input, shape index: {}]   ;;  %s2402_s8 = inlined_call_operand.hbm [shape: f32[32,128], index: 8, kind: output, shape index: {}]  }
   0x1   :  { %14 = vsyncpa [#allocation5], 0 }
   0x2   :  { %16 = vsyncpa [#allocation5 + $0x1], 0  ;;  %s1950_s27 = smov 0   ;;  %s1952_s28 = smov 0  }
   0x3   :  { %s1954_s29 = smov 0   ;;  %s1956_s30 = smov 0  }
   0x4 LB: > { %s1971_s9 = sadd.s32 4294967295, %s1897_s30   ;;  %s1591_s10 = sadd.s32 4294967294, %s1897_s30   ;;  %s1897_s30 = sphi %s1956_s30, %s2410_s30   ;;  %s1893_s29 = sphi %s1954_s29, %s2409_s29   ;;  %s1889_s28 = sphi %s1952_s28, %s2408_s28   ;;  %s1885_s27 = sphi %s1950_s27, %s2407_s27  }
   0x5   : > { %s1975_s11 = sadd.s32 1, %s1897_s30   ;;  %s29_s12 = sadd.s32 1, %s1893_s29 }
   0x6   : > { %s26_s13 = ssub.s32 %s1897_s30, %s1975_s11  ;;  %p36_p0 = scmp.ne.s32.totalorder %s1893_s29, %s1889_s28 }
   0x7   : > { %p27_p1 = scmp.eq.s32.totalorder %s26_s13, 0  ;;  %p37_p2 = scmp.eq.s32.totalorder %s1897_s30, 0 }
   0x8   : > { %p213_p3 = scmp.eq.s32.totalorder %s1971_s9, 1  ;;  %p218_p4 = scmp.ne.s32.totalorder %s1889_s28, %s1885_s27 }
   0x9   : > { %s1987_s14 = scalar_select %p27_p1, %s1893_s29, %s29_s12  }
   0xa   : > { %p1989_p5 = por %p37_p2, %p36_p0  ;;  %p1993_p6 = por %p213_p3, %p36_p0 }
   0xb   : > { %p219_p7 = scmp.eq.s32.totalorder %s1591_s10, 1  ;;  %p1592_p8 = scmp.ge.s32.totalorder %s1897_s30, 1 }
   0xc   : > { %p226_p9 = scmp.lt.s32.totalorder %s1897_s30, 3  ;;  %p1738_p11 = scmp.eq.s32.totalorder %s1971_s9, 0 }
   0xd   : > { %p1999_p10 = por %p219_p7, %p218_p4  ;;  %s252_s21 = sshll.u32 %s2400_s6, 4  ;;  %s253_s21 = int_to_ptr.hbm [resolvable:$true] %s252_s21 }
   0xe   : > { %p2004_p12 = pnand %p1592_p8, %p226_p9  ;;  %s1899_s22 = smov [#allocation3]  }
   0xf   : > { %s254_s23 = sshll.u32 %s1899_s22, 4  ;;  %s1900_s24 = smov 64   ;;  %s255_s23 = int_to_ptr.vmem [resolvable:$true] %s254_s23 }
  0x10   : > { %p1730_p13 = pneg %p2004_p12  ;;  %s1901_s25 = smov 4  }
  0x11   : > { %p1594_p1 = scmp.ge.s32.totalorder %s1897_s30, 2 }
  0x12   : > { %p1731_p0 = pnand %p1738_p11, %p1730_p13 }
  0x13   : > { %267 = sbr.rel (%p1594_p1) target bundleno = 34 (0x22), region = 44 }
  0x14   : > { %1733 = dma.hbm_to_vmem [thread:$0]  (!%p1731_p0), %s253_s21, 1024, %s255_s23, [#allocation4], %s1900_s24, %s1900_s24, %s1901_s25  }
  0x18   : > { %270 = sbr.rel (!%p1989_p5) target bundleno = 34 (0x22), region = 48  ;;  %s272_s26 = sand.u32 (%p1989_p5), 1, %s1893_s29  }
  0x19   : > { %s1693_s10 = sshll.u32 (%p1989_p5), %s1897_s30, 4  ;;  %s1722_s12 = smul.u32 (%p1989_p5), 48, %s272_s26 }
  0x1a   : > { %s277_s20 = scalar_lea.vmem (%p1989_p5), %s2394_s0, %s1693_s10 }
  0x1b   : > { %v316_v0 = vld [vmem:[%s277_s20] sm:$0xff] (%p1989_p5)  ;;  %v318_v1 = vld [vmem:[%s277_s20 + $0x8] sm:$0xff] (%p1989_p5)  ;;  %s274_s21 = scalar_lea.vmem (%p1989_p5), [#allocation2], %s1722_s12 }
  0x1c   : > { %v320_v2 = vld [vmem:[%s277_s20 + $0x20] sm:$0xff] (%p1989_p5)  ;;  %317 = vst [vmem:[%s274_s21] sm:$0xff] (%p1989_p5), %v316_v0  ;;  %v322_v3 = vld [vmem:[%s277_s20 + $0x28] sm:$0xff] (%p1989_p5) }
  0x1d   : > { %319 = vst [vmem:[%s274_s21 + $0x8] sm:$0xff] %v318_v1  ;;  %v324_v4 = vld [vmem:[%s277_s20 + $0x40] sm:$0xff]  ;;  %v326_v5 = vld [vmem:[%s277_s20 + $0x48] sm:$0xff] }
  0x1e   : > { %321 = vst [vmem:[%s274_s21 + $0x10] sm:$0xff] %v320_v2 }
  0x1f   : > { %323 = vst [vmem:[%s274_s21 + $0x18] sm:$0xff] %v322_v3 }
  0x20   : > { %325 = vst [vmem:[%s274_s21 + $0x20] sm:$0xff] %v324_v4 }
  0x21   : > { %327 = vst [vmem:[%s274_s21 + $0x28] sm:$0xff] %v326_v5 }
  0x22 PF: > { %336 = sbr.rel (%p2004_p12) target bundleno = 1039 (0x40f), region = 86  ;;  %s2028_s15 = sand.u32 (!%p2004_p12), 1, %s1889_s28  }
  0x23   : > { %s1723_s22 = smul.u32 (!%p2004_p12), 48, %s2028_s15 }
  0x25   : > { %s2031_s23 = scalar_lea.vmem (!%p2004_p12), [#allocation2], %s1723_s22 }
  0x27   : > { %1876 = dma.done.wait (%p1738_p11), [#allocation4], 1024  }
  0x28   : > { %1878 = vsyncadd (%p1738_p11), [#allocation4], 4294966272  ;;  %v380_v6 = vlaneseq  ;;  %v2039_v8 = vld [vmem:[%s2031_s23 + $0x28] sm:$0xff]  ;;  %v2042_v9 = vld [vmem:[%s2031_s23 + $0x18] sm:$0xff]  ;;  %vm931_vm0 = vcmask 1043456   ;;  %vm906_vm7 = vcmask 457728  }
  0x29   : > { %v2045_v10 = vld [vmem:[%s2031_s23 + $0x8] sm:$0xff]  ;;  %v780_v11 = vperm.slane %v2039_v8, 2  ;;  %v617_v12 = vperm.slane %v2042_v9, 2  ;;  %v787_v14 = vperm.slane %v2039_v8, 3  ;;  %v624_v15 = vperm.slane %v2042_v9, 3  ;;  %v2054_v17 = vld [vmem:[%s2031_s23 + $0x10] sm:$0xff] }
  0x2a   : > { %v386_v7 = vshrl.u32 %v380_v6, 7  ;;  %v454_v13 = vperm.slane %v2045_v10, 2  ;;  %v461_v16 = vperm.slane %v2045_v10, 3  ;;  %v2057_v18 = vld [vmem:[%s2031_s23] sm:$0xff]  ;;  %v547_v19 = vperm.slane %v2054_v17, 0  ;;  %v1695_v56 = vld [vmem:[%s2395_s1 + $0x8] sm:$0xff] }
  0x2b   : > { %v391_v20 = vperm.slane %v2057_v18, 1  ;;  %v384_v21 = vperm.slane %v2057_v18, 0  ;;  %v2063_v22 = vld [vmem:[%s2031_s23 + $0x20] sm:$0xff]  ;;  %v554_v25 = vperm.slane %v2054_v17, 1  ;;  %v468_v26 = vperm.slane %v2045_v10, 4  ;;  %s1599_s20 = sshll.u32 %s2028_s15, 4 }
  0x2c   : > { %1781 = vset.pattern.permute.xlu2 %v386_v7  ;;  %1780 = vset.pattern.permute.xlu1 %v386_v7  ;;  %v717_v23 = vperm.slane %v2063_v22, 1  ;;  %v710_v24 = vperm.slane %v2063_v22, 0  ;;  %v433_v27 = vperm.slane %v2057_v18, 7  ;;  %v426_v28 = vperm.slane %v2057_v18, 6  ;;  %v884_v47 = vld [vmem:[%s2395_s1 + $0x18] sm:$0xf] }
  0x2d   : > { %1779 = vset.pattern.permute.xlu0 %v386_v7  ;;  %v596_v29 = vperm.slane %v2054_v17, 7  ;;  %v589_v30 = vperm.slane %v2054_v17, 6  ;;  %v475_v31 = vperm.slane %v2045_v10, 5  ;;  %v752_v32 = vperm.slane %v2063_v22, 6  ;;  %v1696_v54 = vld [vmem:[%s2395_s1 + $0x10] sm:$0xff]  ;;  %v1694_v60 = vld [vmem:[%s2395_s1] sm:$0xff] }
  0x2e   : > { %v638_v33 = vperm.slane %v2042_v9, 5  ;;  %v631_v34 = vperm.slane %v2042_v9, 4  ;;  %v801_v35 = vperm.slane %v2039_v8, 5  ;;  %v794_v36 = vperm.slane %v2039_v8, 4  ;;  %s1713_s21 = sshll.u32 %s1971_s9, 4  ;;  %s376_s24 = scalar_lea.vmem [#allocation6], %s1599_s20 }
  0x2f   : > { %v759_v37 = vperm.slane %v2063_v22, 7  ;;  %v561_v38 = vperm.slane %v2054_v17, 2  ;;  %v405_v39 = vperm.slane %v2057_v18, 3  ;;  %v398_v40 = vperm.slane %v2057_v18, 2  ;;  %s1507_s18 = scalar_lea.hbm %s2402_s8, %s1713_s21  ;;  %s1508_s25 = sshll.u32 %s376_s24, 4  ;;  %s1509_s25 = int_to_ptr.vmem [resolvable:$true] %s1508_s25 }
  0x30   : > { %v731_v41 = vperm.slane %v2063_v22, 3  ;;  %v724_v42 = vperm.slane %v2063_v22, 2  ;;  %v568_v43 = vperm.slane %v2054_v17, 3  ;;  %v482_v44 = vperm.slane %v2045_v10, 6  ;;  %s1510_s26 = sshll.u32 %s1507_s18, 4  ;;  %s1496_s9 = scalar_lea.sflag [#allocation5], %s2028_s15  ;;  %s1511_s26 = int_to_ptr.hbm [resolvable:$true] %s1510_s26 }
  0x31   : > { %v447_v45 = vperm.slane %v2045_v10, 1  ;;  %v440_v46 = vperm.slane %v2045_v10, 0  ;;  %v898_v48 = vunpack.c.l.b16 %v884_v47  ;;  %v610_v50 = vperm.slane %v2042_v9, 1  ;;  %s1845_s10 = sshra.s32 %s1511_s26, 4  ;;  %s1851_s20 = scalar_lea.hbm %s2402_s8, 32  ;;  %s1846_s10 = int_to_ptr.hbm [resolvable:$true] %s1845_s10 }
  0x32   : > { %v603_v51 = vperm.slane %v2042_v9, 0  ;;  %v489_v53 = vperm.slane %v2045_v10, 7  ;;  %v766_v57 = vperm.slane %v2039_v8, 0  ;;  %v652_v58 = vperm.slane %v2042_v9, 7  ;;  %s1847_s12 = scalar_lea.hbm %s1846_s10, 16  ;;  %p1852_p5 = scmp.lt.s32.totalorder %s1846_s10, %s2402_s8 }
  0x33   : > { %v902_v49 = vpack.c.b16 %v898_v48, %v898_v48  ;;  %v645_v59 = vperm.slane %v2042_v9, 6  ;;  %v815_v62 = vperm.slane %v2039_v8, 7  ;;  %v808_v63 = vperm.slane %v2039_v8, 6  ;;  %p1848_p2 = scmp.ne.s32.totalorder %s1846_s10, %s1847_s12  ;;  %p1853_p7 = scmp.lt.s32.totalorder %s1851_s20, %s1847_s12 }
  0x34   : > { %785 = vperm.xlu2 %1781, %v780_v11   ;;  %622 = vperm.xlu1 %1780, %v617_v12   ;;  %v773_v0 = vperm.slane %v2039_v8, 1  ;;  %v575_v2 = vperm.slane %v2054_v17, 4  ;;  %v419_v3 = vperm.slane %v2057_v18, 5  ;;  %v412_v4 = vperm.slane %v2057_v18, 4 }
  0x35   : > { %459 = vperm.xlu0 %1779, %v454_v13   ;;  %v933_v52 = vsel %vm931_vm0, %v902_v49, 0  ;;  %v2114_v5 = vand.u32 127, %v380_v6  ;;  %v745_v8 = vperm.slane %v2063_v22, 5  ;;  %v738_v11 = vperm.slane %v2063_v22, 4  ;;  %p1849_p3 = pnand %p1848_p2, %p1993_p6  ;;  %p1854_p8 = por %p1853_p7, %p1852_p5 }
  0x36   : > { %1715 = vmatpush.bf16.msra.mxu3 %v933_v52  ;;  %939 = vmatpush.bf16.msra.mxu0 %v933_v52  ;;  %v582_v12 = vperm.slane %v2054_v17, 5  ;;  %v1902_v13 = vmov 0.0  }
  0x37   : > { %1714 = vmatpush.bf16.msra.mxu1 %v933_v52  ;;  %p1850_p4 = pneg %p1849_p3 }
  0x39   : > { %p1855_p9 = pnand %p1854_p8, %p1850_p4 }
  0x3a   : > { %1717 = vmatpush.bf16.msra.mxu3 %v1696_v54  ;;  %940 = vmatpush.bf16.msra.mxu0 %v1696_v54 }
  0x3b   : > { %1716 = vmatpush.bf16.msra.mxu1 %v1696_v54 }
  0x3c   : > { %792 = vperm.xlu2 %1781, %v787_v14   ;;  %629 = vperm.xlu1 %1780, %v624_v15  }
  0x3d   : > { %466 = vperm.xlu0 %1779, %v461_v16  }
  0x3e   : > { %1719 = vmatpush.bf16.msra.mxu3 %v1695_v56  ;;  %941 = vmatpush.bf16.msra.mxu0 %v1695_v56 }
  0x3f   : > { %1718 = vmatpush.bf16.msra.mxu1 %v1695_v56 }
  0x42   : > { %1721 = vmatpush.bf16.msra.mxu3 %v1694_v60  ;;  %942 = vmatpush.bf16.msra.mxu0 %v1694_v60 }
  0x43   : > { %1720 = vmatpush.bf16.msra.mxu1 %v1694_v60 }
  0x44   : > { %552 = vperm.xlu2 %1781, %v547_v19   ;;  %396 = vperm.xlu1 %1780, %v391_v20  }
  0x45   : > { %389 = vperm.xlu0 %1779, %v384_v21  }
  0x4c   : > { %722 = vperm.xlu2 %1781, %v717_v23   ;;  %715 = vperm.xlu1 %1780, %v710_v24  }
  0x4d   : > { %559 = vperm.xlu0 %1779, %v554_v25  }
  0x54   : > { %473 = vperm.xlu2 %1781, %v468_v26   ;;  %438 = vperm.xlu1 %1780, %v433_v27  }
  0x55   : > { %431 = vperm.xlu0 %1779, %v426_v28  }
  0x5c   : > { %601 = vperm.xlu2 %1781, %v596_v29   ;;  %594 = vperm.xlu1 %1780, %v589_v30  }
  0x5d   : > { %480 = vperm.xlu0 %1779, %v475_v31  }
  0x64   : > { %757 = vperm.xlu2 %1781, %v752_v32   ;;  %643 = vperm.xlu1 %1780, %v638_v33  }
  0x65   : > { %636 = vperm.xlu0 %1779, %v631_v34  }
  0x6c   : > { %806 = vperm.xlu2 %1781, %v801_v35   ;;  %799 = vperm.xlu1 %1780, %v794_v36  }
  0x6d   : > { %764 = vperm.xlu0 %1779, %v759_v37  }
  0x74   : > { %566 = vperm.xlu2 %1781, %v561_v38   ;;  %410 = vperm.xlu1 %1780, %v405_v39  }
  0x75   : > { %403 = vperm.xlu0 %1779, %v398_v40  }
  0x7c   : > { %736 = vperm.xlu2 %1781, %v731_v41   ;;  %729 = vperm.xlu1 %1780, %v724_v42  }
  0x7d   : > { %573 = vperm.xlu0 %1779, %v568_v43  }
  0x84   : > { %487 = vperm.xlu2 %1781, %v482_v44   ;;  %452 = vperm.xlu1 %1780, %v447_v45  }
  0x85   : > { %445 = vperm.xlu0 %1779, %v440_v46  }
  0x8c   : > { %615 = vperm.xlu2 %1781, %v610_v50   ;;  %608 = vperm.xlu1 %1780, %v603_v51  }
  0x8d   : > { %494 = vperm.xlu0 %1779, %v489_v53  }
  0x8e   : > { %v786_v55 = vpop.permute.xlu2 %785 }
  0x8f   : > { %vm832_vm3 = vcmp.eq.s32.totalorder %v2114_v5, %v786_v55 }
  0x90   : > { %v848_v20 = vsel %vm832_vm3, 1.0, %v1902_v13 }
  0x94   : > { %771 = vperm.xlu2 %1781, %v766_v57   ;;  %657 = vperm.xlu1 %1780, %v652_v58  }
  0x95   : > { %650 = vperm.xlu0 %1779, %v645_v59  }
  0x96   : > { %v793_v61 = vpop.permute.xlu2 %792 }
  0x97   : > { %vm833_vm5 = vcmp.eq.s32.totalorder %v2114_v5, %v793_v61 }
  0x98   : > { %v849_v23 = vsel %vm833_vm5, 1.0, %v1902_v13 }
  0x9c   : > { %820 = vperm.xlu2 %1781, %v815_v62   ;;  %813 = vperm.xlu1 %1780, %v808_v63  }
  0x9d   : > { %778 = vperm.xlu0 %1779, %v773_v0  }
  0x9e   : > { %v553_v1 = vpop.permute.xlu2 %552 }
  0x9f   : > { %vm659_vm9 = vcmp.eq.s32.totalorder %v2114_v5, %v553_v1 }
  0xa0   : > { %v675_v33 = vsel %vm659_vm9, 1.0, %v1902_v13 }
  0xa4   : > { %580 = vperm.xlu2 %1781, %v575_v2   ;;  %424 = vperm.xlu1 %1780, %v419_v3  }
  0xa5   : > { %417 = vperm.xlu0 %1779, %v412_v4  }
  0xa6   : > { %v623_v7 = vpop.permute.xlu1 %622  ;;  %v723_v9 = vpop.permute.xlu2 %722 }
  0xa7   : > { %v460_v10 = vpop.permute.xlu0 %459  ;;  %vm669_vm1 = vcmp.eq.s32.totalorder %v2114_v5, %v623_v7  ;;  %vm823_vm12 = vcmp.eq.s32.totalorder %v2114_v5, %v723_v9 }
  0xa8   : > { %vm506_vm2 = vcmp.eq.s32.totalorder %v2114_v5, %v460_v10  ;;  %v685_v14 = vsel %vm669_vm1, 1.0, %v1902_v13  ;;  %v839_v39 = vsel %vm823_vm12, 1.0, %v1902_v13 }
  0xa9   : > { %v522_v6 = vsel %vm506_vm2, 1.0, %v1902_v13 }
  0xaa   : > { %v701_v18 = vadd.f32 %v685_v14, %v522_v6 }
  0xac   : > { %750 = vperm.xlu2 %1781, %v745_v8   ;;  %743 = vperm.xlu1 %1780, %v738_v11   ;;  %v864_v24 = vadd.f32 %v848_v20, %v701_v18 }
  0xad   : > { %587 = vperm.xlu0 %1779, %v582_v12  }
  0xae   : > { %v630_v15 = vpop.permute.xlu1 %629  ;;  %v2125_v16 = vpop.permute.xlu2 %473 }
  0xaf   : > { %vm670_vm4 = vcmp.eq.s32.totalorder %v2114_v5, %v630_v15  ;;  %v467_v17 = vpop.permute.xlu0 %466 }
  0xb0   : > { %v686_v19 = vsel %vm670_vm4, 1.0, %v1902_v13  ;;  %vm507_vm6 = vcmp.eq.s32.totalorder %v2114_v5, %v467_v17  ;;  %vm508_vm4 = vcmp.eq.s32.totalorder %v2114_v5, %v2125_v16 }
  0xb1   : > { %v523_v21 = vsel %vm507_vm6, 1.0, %v1902_v13  ;;  %v524_v59 = vsel %vm508_vm4, 1.0, %v1902_v13 }
  0xb2   : > { %v702_v22 = vadd.f32 %v686_v19, %v523_v21 }
  0xb4   : > { %v865_v25 = vadd.f32 %v849_v23, %v702_v22 }
  0xb6   : > { %v397_v26 = vpop.permute.xlu1 %396  ;;  %v875_v27 = vpack.c.bf16 %v865_v25, %v864_v24  ;;  %v602_v29 = vpop.permute.xlu2 %601 }
  0xb7   : > { %v390_v28 = vpop.permute.xlu0 %389  ;;  %vm497_vm10 = vcmp.eq.s32.totalorder %v2114_v5, %v397_v26  ;;  %vm666_vm5 = vcmp.eq.s32.totalorder %v2114_v5, %v602_v29 }
  0xb8   : > { %1621 = vmatmul.msk.bf16.vlgmr.msra.gmra.mxu3 %vm906_vm7, %v875_v27  ;;  %vm496_vm8 = vcmp.eq.s32.totalorder %v2114_v5, %v390_v28  ;;  %v513_v34 = vsel %vm497_vm10, 1.0, %v1902_v13  ;;  %v682_v62 = vsel %vm666_vm5, 1.0, %v1902_v13 }
  0xb9   : > { %v512_v31 = vsel %vm496_vm8, 1.0, %v1902_v13 }
  0xba   : > { %v691_v37 = vadd.f32 %v675_v33, %v512_v31 }
  0xbe   : > { %v716_v30 = vpop.permute.xlu1 %715  ;;  %v758_v40 = vpop.permute.xlu2 %757 }
  0xbf   : > { %vm822_vm11 = vcmp.eq.s32.totalorder %v2114_v5, %v716_v30  ;;  %v560_v32 = vpop.permute.xlu0 %559  ;;  %vm828_vm8 = vcmp.eq.s32.totalorder %v2114_v5, %v758_v40 }
  0xc0   : > { %vm660_vm13 = vcmp.eq.s32.totalorder %v2114_v5, %v560_v32  ;;  %v838_v35 = vsel %vm822_vm11, 1.0, %v1902_v13  ;;  %v844_v4 = vsel %vm828_vm8, 1.0, %v1902_v13 }
  0xc1   : > { %v676_v36 = vsel %vm660_vm13, 1.0, %v1902_v13  ;;  %v854_v41 = vadd.f32 %v838_v35, %v691_v37 }
  0xc2   : > { %v692_v38 = vadd.f32 %v676_v36, %v513_v34 }
  0xc4   : > { %v855_v42 = vadd.f32 %v839_v39, %v692_v38 }
  0xc6   : > { %v439_v43 = vpop.permute.xlu1 %438  ;;  %v870_v44 = vpack.c.bf16 %v855_v42, %v854_v41  ;;  %v807_v46 = vpop.permute.xlu2 %806 }
  0xc7   : > { %v432_v45 = vpop.permute.xlu0 %431  ;;  %vm503_vm2 = vcmp.eq.s32.totalorder %v2114_v5, %v439_v43  ;;  %vm835_vm6 = vcmp.eq.s32.totalorder %v2114_v5, %v807_v46 }
  0xc8   : > { %1616 = vmatmul.msk.bf16.vlgmr.msra.gmra.mxu0 %vm906_vm7, %v870_v44  ;;  %vm502_vm3 = vcmp.eq.s32.totalorder %v2114_v5, %v432_v45  ;;  %v519_v56 = vsel %vm503_vm2, 1.0, %v1902_v13  ;;  %v851_v1 = vsel %vm835_vm6, 1.0, %v1902_v13 }
  0xc9   : > { %v518_v57 = vsel %vm502_vm3, 1.0, %v1902_v13  ;;  %v698_v2 = vadd.f32 %v682_v62, %v519_v56 }
  0xce   : > { %v595_v47 = vpop.permute.xlu1 %594  ;;  %v567_v50 = vpop.permute.xlu2 %566 }
  0xcf   : > { %v481_v48 = vpop.permute.xlu0 %480  ;;  %vm665_vm15 = vcmp.eq.s32.totalorder %v2114_v5, %v595_v47  ;;  %vm661_vm12 = vcmp.eq.s32.totalorder %v2114_v5, %v567_v50 }
  0xd0   : > { %vm509_vm0 = vcmp.eq.s32.totalorder %v2114_v5, %v481_v48  ;;  %v681_v53 = vsel %vm665_vm15, 1.0, %v1902_v13  ;;  %v677_v21 = vsel %vm661_vm12, 1.0, %v1902_v13 }
  0xd1   : > { %v525_v54 = vsel %vm509_vm0, 1.0, %v1902_v13  ;;  %v697_v60 = vadd.f32 %v681_v53, %v518_v57 }
  0xd3   : > { %v860_v11 = vadd.f32 %v844_v4, %v697_v60 }
  0xd6   : > { %v644_v49 = vpop.permute.xlu1 %643  ;;  %v737_v7 = vpop.permute.xlu2 %736 }
  0xd7   : > { %vm672_vm14 = vcmp.eq.s32.totalorder %v2114_v5, %v644_v49  ;;  %v637_v51 = vpop.permute.xlu0 %636  ;;  %vm825_vm15 = vcmp.eq.s32.totalorder %v2114_v5, %v737_v7 }
  0xd8   : > { %vm671_vm1 = vcmp.eq.s32.totalorder %v2114_v5, %v637_v51  ;;  %v688_v52 = vsel %vm672_vm14, 1.0, %v1902_v13  ;;  %v841_v27 = vsel %vm825_vm15, 1.0, %v1902_v13 }
  0xd9   : > { %v687_v55 = vsel %vm671_vm1, 1.0, %v1902_v13  ;;  %v704_v58 = vadd.f32 %v688_v52, %v525_v54 }
  0xda   : > { %v703_v63 = vadd.f32 %v687_v55, %v524_v59 }
  0xdb   : > { %v867_v9 = vadd.f32 %v851_v1, %v704_v58 }
  0xde   : > { %v800_v61 = vpop.permute.xlu1 %799  ;;  %v488_v17 = vpop.permute.xlu2 %487 }
  0xdf   : > { %vm834_vm9 = vcmp.eq.s32.totalorder %v2114_v5, %v800_v61  ;;  %v765_v0 = vpop.permute.xlu0 %764  ;;  %vm510_vm8 = vcmp.eq.s32.totalorder %v2114_v5, %v488_v17 }
  0xe0   : > { %v850_v3 = vsel %vm834_vm9, 1.0, %v1902_v13  ;;  %vm829_vm10 = vcmp.eq.s32.totalorder %v2114_v5, %v765_v0  ;;  %v526_v47 = vsel %vm510_vm8, 1.0, %v1902_v13  ;;  %vm1209_vm8 = vcmask 1045509  }
  0xe1   : > { %v866_v10 = vadd.f32 %v850_v3, %v703_v63  ;;  %v845_v8 = vsel %vm829_vm10, 1.0, %v1902_v13 }
  0xe2   : > { %v861_v12 = vadd.f32 %v845_v8, %v698_v2 }
  0xe3   : > { %v876_v14 = vpack.c.bf16 %v867_v9, %v866_v10 }
  0xe4   : > { %v873_v6 = vpack.c.bf16 %v861_v12, %v860_v11 }
  0xe5   : > { %1622 = vmatmul.msk.bf16.gmra.mxu3 %vm906_vm7, %v876_v14 }
  0xe6   : > { %1619 = vmatmul.msk.bf16.vlgmr.msra.gmra.mxu1 %vm906_vm7, %v873_v6  ;;  %v411_v15 = vpop.permute.xlu1 %410  ;;  %v616_v30 = vpop.permute.xlu2 %615 }
  0xe7   : > { %v404_v16 = vpop.permute.xlu0 %403  ;;  %vm499_vm13 = vcmp.eq.s32.totalorder %v2114_v5, %v411_v15  ;;  %vm668_vm9 = vcmp.eq.s32.totalorder %v2114_v5, %v616_v30 }
  0xe8   : > { %vm498_vm11 = vcmp.eq.s32.totalorder %v2114_v5, %v404_v16  ;;  %v515_v22 = vsel %vm499_vm13, 1.0, %v1902_v13  ;;  %v684_v50 = vsel %vm668_vm9, 1.0, %v1902_v13  ;;  %vm1211_vm9 = vcmask 1046534  }
  0xe9   : > { %v514_v19 = vsel %vm498_vm11, 1.0, %v1902_v13 }
  0xea   : > { %v693_v25 = vadd.f32 %v677_v21, %v514_v19 }
  0xee   : > { %v730_v18 = vpop.permute.xlu1 %729  ;;  %v772_v35 = vpop.permute.xlu2 %771 }
  0xef   : > { %vm824_vm14 = vcmp.eq.s32.totalorder %v2114_v5, %v730_v18  ;;  %v574_v20 = vpop.permute.xlu0 %573  ;;  %vm830_vm11 = vcmp.eq.s32.totalorder %v2114_v5, %v772_v35 }
  0xf0   : > { %vm662_vm0 = vcmp.eq.s32.totalorder %v2114_v5, %v574_v20  ;;  %v840_v23 = vsel %vm824_vm14, 1.0, %v1902_v13  ;;  %v846_v56 = vsel %vm830_vm11, 1.0, %v1902_v13 }
  0xf1   : > { %v678_v24 = vsel %vm662_vm0, 1.0, %v1902_v13  ;;  %v856_v28 = vadd.f32 %v840_v23, %v693_v25 }
  0xf2   : > { %v694_v26 = vadd.f32 %v678_v24, %v515_v22  ;;  %v2235_v22 = vld [vmem:[%s2397_s3] sm:$0xff] }
  0xf4   : > { %v857_v29 = vadd.f32 %v841_v27, %v694_v26 }
  0xf6   : > { %v453_v31 = vpop.permute.xlu1 %452  ;;  %v871_v32 = vpack.c.bf16 %v857_v29, %v856_v28  ;;  %v821_v39 = vpop.permute.xlu2 %820 }
  0xf7   : > { %v446_v33 = vpop.permute.xlu0 %445  ;;  %vm505_vm5 = vcmp.eq.s32.totalorder %v2114_v5, %v453_v31  ;;  %vm837_vm10 = vcmp.eq.s32.totalorder %v2114_v5, %v821_v39 }
  0xf8   : > { %1617 = vmatmul.msk.bf16.gmra.mxu0 %vm906_vm7, %v871_v32  ;;  %vm504_vm6 = vcmp.eq.s32.totalorder %v2114_v5, %v446_v33  ;;  %v521_v44 = vsel %vm505_vm5, 1.0, %v1902_v13  ;;  %v853_v53 = vsel %vm837_vm10, 1.0, %v1902_v13  ;;  %vm1205_vm5 = vcmask 1043459  }
  0xf9   : > { %v520_v45 = vsel %vm504_vm6, 1.0, %v1902_v13  ;;  %v700_v54 = vadd.f32 %v684_v50, %v521_v44  ;;  %vm1207_vm6 = vcmask 1044484   ;;  %vm1213_vm10 = vcmask 1047559  }
  0xfe   : > { %v609_v34 = vpop.permute.xlu1 %608  ;;  %v581_v62 = vpop.permute.xlu2 %580 }
  0xff   : > { %v495_v36 = vpop.permute.xlu0 %494  ;;  %vm667_vm2 = vcmp.eq.s32.totalorder %v2114_v5, %v609_v34  ;;  %vm663_vm15 = vcmp.eq.s32.totalorder %v2114_v5, %v581_v62 }
 0x100   : > { %vm511_vm3 = vcmp.eq.s32.totalorder %v2114_v5, %v495_v36  ;;  %v683_v41 = vsel %vm667_vm2, 1.0, %v1902_v13  ;;  %v679_v10 = vsel %vm663_vm15, 1.0, %v1902_v13 }
 0x101   : > { %v527_v42 = vsel %vm511_vm3, 1.0, %v1902_v13  ;;  %v699_v48 = vadd.f32 %v683_v41, %v520_v45 }
 0x103   : > { %v862_v60 = vadd.f32 %v846_v56, %v699_v48 }
 0x106   : > { %v658_v37 = vpop.permute.xlu1 %657  ;;  %v751_v3 = vpop.permute.xlu2 %750 }
 0x107   : > { %vm674_vm1 = vcmp.eq.s32.totalorder %v2114_v5, %v658_v37  ;;  %v651_v38 = vpop.permute.xlu0 %650  ;;  %vm827_vm2 = vcmp.eq.s32.totalorder %v2114_v5, %v751_v3 }
 0x108   : > { %vm673_vm4 = vcmp.eq.s32.totalorder %v2114_v5, %v651_v38  ;;  %v690_v40 = vsel %vm674_vm1, 1.0, %v1902_v13  ;;  %v843_v15 = vsel %vm827_vm2, 1.0, %v1902_v13 }
 0x109   : > { %v689_v43 = vsel %vm673_vm4, 1.0, %v1902_v13  ;;  %v706_v46 = vadd.f32 %v690_v40, %v527_v42  ;;  %vm1203_vm4 = vcmask 1042434  }
 0x10a   : > { %v705_v51 = vadd.f32 %v689_v43, %v526_v47 }
 0x10b   : > { %v869_v57 = vadd.f32 %v853_v53, %v706_v46 }
 0x10e   : > { %v814_v49 = vpop.permute.xlu1 %813 }
 0x10f   : > { %vm836_vm12 = vcmp.eq.s32.totalorder %v2114_v5, %v814_v49  ;;  %v779_v52 = vpop.permute.xlu0 %778 }
 0x110   : > { %v852_v55 = vsel %vm836_vm12, 1.0, %v1902_v13  ;;  %vm831_vm13 = vcmp.eq.s32.totalorder %v2114_v5, %v779_v52 }
 0x111   : > { %v868_v58 = vadd.f32 %v852_v55, %v705_v51  ;;  %v847_v59 = vsel %vm831_vm13, 1.0, %v1902_v13 }
 0x112   : > { %v863_v61 = vadd.f32 %v847_v59, %v700_v54 }
 0x113   : > { %v877_v63 = vpack.c.bf16 %v869_v57, %v868_v58 }
 0x114   : > { %v874_v0 = vpack.c.bf16 %v863_v61, %v862_v60 }
 0x115   : > { %1623 = vmatmul.msk.bf16.gmra.mxu3 %vm906_vm7, %v877_v63  ;;  %v1704_v63 = vld [vmem:[%s2398_s4 + $0x38] sm:$0xff] }
 0x116   : > { %1620 = vmatmul.msk.bf16.gmra.mxu1 %vm906_vm7, %v874_v0  ;;  %v425_v1 = vpop.permute.xlu1 %424 }
 0x117   : > { %v418_v2 = vpop.permute.xlu0 %417  ;;  %vm501_vm0 = vcmp.eq.s32.totalorder %v2114_v5, %v425_v1  ;;  %1272 = vmatpush.bf16.msrb.mxu1 %v1704_v63  ;;  %v1698_v63 = vld [vmem:[%s2398_s4 + $0x8] sm:$0xff] }
 0x118   : > { %vm500_vm14 = vcmp.eq.s32.totalorder %v2114_v5, %v418_v2  ;;  %v517_v8 = vsel %vm501_vm0, 1.0, %v1902_v13 }
 0x119   : > { %v516_v7 = vsel %vm500_vm14, 1.0, %v1902_v13 }
 0x11a   : > { %v695_v14 = vadd.f32 %v679_v10, %v516_v7 }
 0x11e   : > { %v744_v4 = vpop.permute.xlu1 %743 }
 0x11f   : > { %vm826_vm1 = vcmp.eq.s32.totalorder %v2114_v5, %v744_v4  ;;  %v588_v9 = vpop.permute.xlu0 %587 }
 0x120   : > { %vm664_vm3 = vcmp.eq.s32.totalorder %v2114_v5, %v588_v9  ;;  %v842_v11 = vsel %vm826_vm1, 1.0, %v1902_v13  ;;  %v2229_v5 = vld [vmem:[%s2396_s2] ss:$0 sm:$0xff] }
 0x121   : > { %v680_v12 = vsel %vm664_vm3, 1.0, %v1902_v13  ;;  %v858_v16 = vadd.f32 %v842_v11, %v695_v14 }
 0x122   : > { %v696_v6 = vadd.f32 %v680_v12, %v517_v8  ;;  %v1703_v8 = vld [vmem:[%s2398_s4 + $0x30] sm:$0xff] }
 0x123   : > { %1273 = vmatpush.bf16.msrb.mxu1 %v1703_v8 }
 0x124   : > { %v859_v17 = vadd.f32 %v843_v15, %v696_v6 }
 0x126   : > { %v872_v18 = vpack.c.bf16 %v859_v17, %v858_v16  ;;  %v1702_v17 = vld [vmem:[%s2398_s4 + $0x28] sm:$0xff] }
 0x127   : > { %1274 = vmatpush.bf16.msrb.mxu1 %v1702_v17 }
 0x128   : > { %1618 = vmatmul.msk.bf16.gmra.mxu0 %vm906_vm7, %v872_v18  ;;  %vm1201_vm7 = vcmask 1041409  }
 0x13b   : > { %v969_v40 = vpop.f32.mrf.mxu3 }
 0x13c   : > { %v998_v58 = vadd.f32 %v2229_v5, %v969_v40 }
 0x13e   : > { %v1014_v1 = vmax.f32 %v998_v58, 0.0 }
 0x140   : > { %v1031_v11 = vmul.f32 %v2235_v22, %v1014_v1 }
 0x142   : > { %v1097_v18 = vrot.slane %v1031_v11, 4 }
 0x143   : > { %v971_v43 = vpop.f32.mrf.mxu3 }
 0x144   : > { %v999_v3 = vadd.f32 %v2229_v5, %v971_v43 }
 0x145   : > { %v944_v19 = vpop.f32.mrf.mxu0 }
 0x146   : > { %v988_v20 = vadd.f32 %v2229_v5, %v944_v19  ;;  %v1015_v14 = vmax.f32 %v999_v3, 0.0 }
 0x148   : > { %v1004_v21 = vmax.f32 %v988_v20, 0.0  ;;  %v1032_v19 = vmul.f32 %v2235_v22, %v1015_v14 }
 0x14a   : > { %v1021_v13 = vmul.f32 %v2235_v22, %v1004_v21 }
 0x14c   : > { %v1037_v23 = vrot.slane %v1021_v13, 4 }
 0x14d   : > { %v946_v24 = vpop.f32.mrf.mxu0 }
 0x14e   : > { %v1038_v25 = vmax.f32 %v1021_v13, %v1037_v23  ;;  %v989_v26 = vadd.f32 %v2229_v5, %v946_v24  ;;  %v1701_v24 = vld [vmem:[%s2398_s4 + $0x20] sm:$0xff] }
 0x14f   : > { %1275 = vmatpush.bf16.msrb.mxu1 %v1701_v24 }
 0x150   : > { %v1005_v27 = vmax.f32 %v989_v26, 0.0  ;;  %v1039_v28 = vrot.slane %v1038_v25, 2 }
 0x152   : > { %v1022_v29 = vmul.f32 %v2235_v22, %v1005_v27  ;;  %v1040_v31 = vmax.f32 %v1038_v25, %v1039_v28  ;;  %v1098_v25 = vmax.f32 %v1031_v11, %v1097_v18  ;;  %v1103_v27 = vrot.slane %v1032_v19, 4 }
 0x154   : > { %v1043_v30 = vrot.slane %v1022_v29, 4  ;;  %v1041_v34 = vrot.slane %v1040_v31, 1  ;;  %v1104_v40 = vmax.f32 %v1032_v19, %v1103_v27 }
 0x156   : > { %v1044_v32 = vmax.f32 %v1022_v29, %v1043_v30  ;;  %v2240_v37 = vmax.f32 %v1040_v31, %v1041_v34  ;;  %v1700_v34 = vld [vmem:[%s2398_s4 + $0x18] sm:$0xff] }
 0x157   : > { %1276 = vmatpush.bf16.msrb.mxu1 %v1700_v34 }
 0x158   : > { %v1045_v33 = vrot.slane %v1044_v32, 2 }
 0x15a   : > { %v1046_v35 = vmax.f32 %v1044_v32, %v1045_v33 }
 0x15c   : > { %v1047_v36 = vrot.slane %v1046_v35, 1 }
 0x15e   : > { %v2242_v38 = vmax.f32 %v1046_v35, %v1047_v36  ;;  %v1099_v36 = vrot.slane %v1098_v25, 2 }
 0x160   : > { %v1346_v39 = vsel %vm1201_vm7, %v2242_v38, %v2240_v37 }
 0x163   : > { %v959_v53 = vpop.f32.mrf.mxu1 }
 0x164   : > { %v994_v28 = vadd.f32 %v2229_v5, %v959_v53 }
 0x168   : > { %v974_v50 = vpop.f32.mrf.mxu3 }
 0x169   : > { %v1000_v7 = vadd.f32 %v2229_v5, %v974_v50 }
 0x16b   : > { %v961_v4 = vpop.f32.mrf.mxu1  ;;  %v1016_v6 = vmax.f32 %v1000_v7, 0.0  ;;  %v1697_v7 = vld [vmem:[%s2398_s4] sm:$0xff] }
 0x16c   : > { %v995_v29 = vadd.f32 %v2229_v5, %v961_v4 }
 0x16d   : > { %v1033_v21 = vmul.f32 %v2235_v22, %v1016_v6 }
 0x16f   : > { %v1109_v30 = vrot.slane %v1033_v21, 4 }
 0x170   : > { %v976_v0 = vpop.f32.mrf.mxu3 }
 0x171   : > { %v1001_v9 = vadd.f32 %v2229_v5, %v976_v0 }
 0x173   : > { %v1017_v15 = vmax.f32 %v1001_v9, 0.0 }
 0x175   : > { %v949_v41 = vpop.f32.mrf.mxu0  ;;  %v1034_v13 = vmul.f32 %v2235_v22, %v1017_v15 }
 0x176   : > { %v990_v42 = vadd.f32 %v2229_v5, %v949_v41  ;;  %v1010_v41 = vmax.f32 %v994_v28, 0.0 }
 0x177   : > { %v1115_v31 = vrot.slane %v1034_v13, 4 }
 0x178   : > { %v1006_v44 = vmax.f32 %v990_v42, 0.0  ;;  %v1011_v42 = vmax.f32 %v995_v29, 0.0 }
 0x17a   : > { %v1023_v45 = vmul.f32 %v2235_v22, %v1006_v44 }
 0x17c   : > { %v1049_v46 = vrot.slane %v1023_v45, 4 }
 0x17d   : > { %v951_v47 = vpop.f32.mrf.mxu0 }
 0x17e   : > { %v1050_v48 = vmax.f32 %v1023_v45, %v1049_v46  ;;  %v991_v49 = vadd.f32 %v2229_v5, %v951_v47  ;;  %v1110_v45 = vmax.f32 %v1033_v21, %v1109_v30  ;;  %v1116_v46 = vmax.f32 %v1034_v13, %v1115_v31 }
 0x180   : > { %v1051_v51 = vrot.slane %v1050_v48, 2  ;;  %v1007_v52 = vmax.f32 %v991_v49, 0.0  ;;  %v1699_v49 = vld [vmem:[%s2398_s4 + $0x10] sm:$0xff]  ;;  %v1111_v58 = vrot.slane %v1110_v45, 2 }
 0x181   : > { %1277 = vmatpush.bf16.msrb.mxu1 %v1699_v49 }
 0x182   : > { %v1052_v54 = vmax.f32 %v1050_v48, %v1051_v51  ;;  %v1024_v55 = vmul.f32 %v2235_v22, %v1007_v52  ;;  %v1100_v51 = vmax.f32 %v1098_v25, %v1099_v36  ;;  %v1112_v14 = vmax.f32 %v1110_v45, %v1111_v58 }
 0x184   : > { %v1053_v56 = vrot.slane %v1052_v54, 1  ;;  %v1055_v57 = vrot.slane %v1024_v55, 4  ;;  %v1101_v3 = vrot.slane %v1100_v51, 1  ;;  %v1113_v28 = vrot.slane %v1112_v14, 1 }
 0x185   : > { %1278 = vmatpush.bf16.msrb.mxu1 %v1698_v63 }
 0x186   : > { %v2252_v59 = vmax.f32 %v1052_v54, %v1053_v56  ;;  %v1056_v60 = vmax.f32 %v1024_v55, %v1055_v57  ;;  %v1105_v54 = vrot.slane %v1104_v40, 2  ;;  %v1027_v55 = vmul.f32 %v2235_v22, %v1010_v41 }
 0x187   : > { %v1028_v56 = vmul.f32 %v2235_v22, %v1011_v42  ;;  %v1102_v21 = vmax.f32 %v1100_v51, %v1101_v3 }
 0x188   : > { %v1347_v61 = vsel %vm1203_vm4, %v2252_v59, %v1346_v39  ;;  %v1057_v62 = vrot.slane %v1056_v60, 2  ;;  %v1106_v9 = vmax.f32 %v1104_v40, %v1105_v54 }
 0x189   : > { %v1079_v8 = vrot.slane %v1028_v56, 4  ;;  %1279 = vmatpush.bf16.msrb.mxu1 %v1697_v7 }
 0x18a   : > { %v1058_v2 = vmax.f32 %v1056_v60, %v1057_v62  ;;  %v1117_v60 = vrot.slane %v1116_v46, 2  ;;  %v1107_v24 = vrot.slane %v1106_v9, 1 }
 0x18c   : > { %v1059_v10 = vrot.slane %v1058_v2, 1  ;;  %v1118_v6 = vmax.f32 %v1116_v46, %v1117_v60  ;;  %v1108_v40 = vmax.f32 %v1106_v9, %v1107_v24 }
 0x18e   : > { %v2266_v12 = vmax.f32 %v1058_v2, %v1059_v10  ;;  %v1073_v10 = vrot.slane %v1027_v55, 4  ;;  %v1119_v29 = vrot.slane %v1118_v6, 1  ;;  %v1144_v7 = vpack.c.bf16 %v1108_v40, %v1108_v40 }
 0x190   : > { %v2270_v16 = vsel %vm1205_vm5, %v2266_v12, %v1347_v61  ;;  %v1074_v25 = vmax.f32 %v1027_v55, %v1073_v10  ;;  %v2307_v45 = vmax.f32 %v1118_v6, %v1119_v29 }
 0x192   : > { %v1075_v41 = vrot.slane %v1074_v25, 2  ;;  %v1146_v29 = vpack.c.bf16 %v2307_v45, %v2307_v45 }
 0x193   : > { %v964_v20 = vpop.f32.mrf.mxu1 }
 0x194   : > { %v996_v23 = vadd.f32 %v2229_v5, %v964_v20  ;;  %v1076_v9 = vmax.f32 %v1074_v25, %v1075_v41  ;;  %v1198_v41 = vunpack.c.l.b16 %v1146_v29 }
 0x196   : > { %v1012_v26 = vmax.f32 %v996_v23, 0.0 }
 0x198   : > { %v1029_v32 = vmul.f32 %v2235_v22, %v1012_v26  ;;  %v979_v33 = vpop.f32.mrf.mxu3  ;;  %v1080_v26 = vmax.f32 %v1028_v56, %v1079_v8 }
 0x199   : > { %v1002_v35 = vadd.f32 %v2229_v5, %v979_v33 }
 0x19a   : > { %v1085_v39 = vrot.slane %v1029_v32, 4  ;;  %v1081_v42 = vrot.slane %v1080_v26, 2 }
 0x19b   : > { %v1018_v43 = vmax.f32 %v1002_v35, 0.0  ;;  %v966_v44 = vpop.f32.mrf.mxu1  ;;  %v1143_v35 = vpack.c.bf16 %v1102_v21, %v1102_v21 }
 0x19c   : > { %v1086_v47 = vmax.f32 %v1029_v32, %v1085_v39  ;;  %v997_v48 = vadd.f32 %v2229_v5, %v966_v44  ;;  %v1114_v44 = vmax.f32 %v1112_v14, %v1113_v28  ;;  %v1082_v10 = vmax.f32 %v1080_v26, %v1081_v42 }
 0x19d   : > { %v1035_v50 = vmul.f32 %v2235_v22, %v1018_v43  ;;  %v1135_v28 = vpack.c.bf16 %v2252_v59, %v2252_v59 }
 0x19e   : > { %v1087_v52 = vrot.slane %v1086_v47, 2  ;;  %v1013_v53 = vmax.f32 %v997_v48, 0.0  ;;  %v1083_v24 = vrot.slane %v1082_v10, 1 }
 0x19f   : > { %v1121_v57 = vrot.slane %v1035_v50, 4 }
 0x1a0   : > { %v1030_v61 = vmul.f32 %v2235_v22, %v1013_v53  ;;  %v981_v62 = vpop.f32.mrf.mxu3  ;;  %v1088_v0 = vmax.f32 %v1086_v47, %v1087_v52 }
 0x1a1   : > { %v1122_v1 = vmax.f32 %v1035_v50, %v1121_v57  ;;  %v1003_v2 = vadd.f32 %v2229_v5, %v981_v62 }
 0x1a2   : > { %v1091_v4 = vrot.slane %v1030_v61, 4  ;;  %v1089_v17 = vrot.slane %v1088_v0, 1 }
 0x1a3   : > { %v1019_v11 = vmax.f32 %v1003_v2, 0.0  ;;  %v1123_v18 = vrot.slane %v1122_v1, 2 }
 0x1a4   : > { %v1092_v15 = vmax.f32 %v1030_v61, %v1091_v4  ;;  %v1090_v32 = vmax.f32 %v1088_v0, %v1089_v17  ;;  %v1195_v17 = vunpack.c.l.b16 %v1143_v35 }
 0x1a5   : > { %v1036_v19 = vmul.f32 %v2235_v22, %v1019_v11  ;;  %v954_v20 = vpop.f32.mrf.mxu0  ;;  %v1124_v33 = vmax.f32 %v1122_v1, %v1123_v18 }
 0x1a6   : > { %v1093_v13 = vrot.slane %v1092_v15, 2  ;;  %v992_v23 = vadd.f32 %v2229_v5, %v954_v20  ;;  %v1141_v48 = vpack.c.bf16 %v1090_v32, %v1090_v32  ;;  %v1077_v20 = vrot.slane %v1076_v9, 1 }
 0x1a7   : > { %v1127_v27 = vrot.slane %v1036_v19, 4  ;;  %v1125_v49 = vrot.slane %v1124_v33, 1 }
 0x1a8   : > { %v1094_v30 = vmax.f32 %v1092_v15, %v1093_v13  ;;  %v1008_v31 = vmax.f32 %v992_v23, 0.0  ;;  %v1193_v2 = vunpack.c.l.b16 %v1141_v48  ;;  %v1196_v23 = vunpack.c.l.b16 %v1144_v7  ;;  %v1710_v7 = vld [vmem:[#allocation3 + $0x28] sm:$0xff] }
 0x1a9   : > { %v1128_v34 = vmax.f32 %v1036_v19, %v1127_v27  ;;  %v1126_v63 = vmax.f32 %v1124_v33, %v1125_v49  ;;  %v1133_v27 = vpack.c.bf16 %v2240_v37, %v2240_v37  ;;  %v1078_v33 = vmax.f32 %v1076_v9, %v1077_v20  ;;  %v1709_v9 = vld [vmem:[#allocation3 + $0x20] sm:$0xff] }
 0x1aa   : > { %v1095_v36 = vrot.slane %v1094_v30, 1  ;;  %v1025_v39 = vmul.f32 %v2235_v22, %v1008_v31  ;;  %v1187_v37 = vunpack.c.l.b16 %v1135_v28 }
 0x1ab   : > { %v1129_v43 = vrot.slane %v1128_v34, 2 }
 0x1ac   : > { %v1096_v46 = vmax.f32 %v1094_v30, %v1095_v36  ;;  %v1061_v47 = vrot.slane %v1025_v39, 4 }
 0x1ad   : > { %v1130_v50 = vmax.f32 %v1128_v34, %v1129_v43  ;;  %v956_v51 = vpop.f32.mrf.mxu0 }
 0x1ae   : > { %v1142_v52 = vpack.c.bf16 %v1096_v46, %v1096_v46  ;;  %v1353_v53 = vsel %vm1201_vm7, %v1096_v46, %v1090_v32  ;;  %v1062_v54 = vmax.f32 %v1025_v39, %v1061_v47  ;;  %v993_v55 = vadd.f32 %v2229_v5, %v956_v51 }
 0x1af   : > { %v1354_v56 = vsel %vm1203_vm4, %v1102_v21, %v1353_v53  ;;  %v1131_v57 = vrot.slane %v1130_v50, 1  ;;  %v1145_v21 = vpack.c.bf16 %v1114_v44, %v1114_v44  ;;  %v1185_v39 = vunpack.c.l.b16 %v1133_v27 }
 0x1b0   : > { %v1194_v58 = vunpack.c.l.b16 %v1142_v52  ;;  %v1063_v60 = vrot.slane %v1062_v54, 2  ;;  %v1009_v61 = vmax.f32 %v993_v55, 0.0  ;;  %v1355_v62 = vsel %vm1205_vm5, %v1108_v40, %v1354_v56 }
 0x1b1   : > { %v1132_v0 = vmax.f32 %v1130_v50, %v1131_v57  ;;  %v1356_v1 = vsel %vm1207_vm6, %v1114_v44, %v1355_v62  ;;  %v1197_v34 = vunpack.c.l.b16 %v1145_v21  ;;  %v1147_v40 = vpack.c.bf16 %v1126_v63, %v1126_v63  ;;  %v1705_v21 = vld [vmem:[#allocation3] sm:$0xff] }
 0x1b2   : > { %v1064_v3 = vmax.f32 %v1062_v54, %v1063_v60  ;;  %v1026_v4 = vmul.f32 %v2235_v22, %v1009_v61  ;;  %v1357_v5 = vsel %vm1209_vm8, %v2307_v45, %v1356_v1  ;;  %v1215_v11 = vsel %vm1201_vm7, %v1194_v58, %v1193_v2 }
 0x1b3   : > { %v1358_v8 = vsel %vm1211_vm9, %v1126_v63, %v1357_v5  ;;  %v1134_v22 = vpack.c.bf16 %v2242_v38, %v2242_v38  ;;  %v1216_v13 = vsel %vm1203_vm4, %v1195_v17, %v1215_v11  ;;  %v1136_v38 = vpack.c.bf16 %v2266_v12, %v2266_v12  ;;  %v1711_v5 = vld [vmem:[#allocation3 + $0x30] sm:$0xff]  ;;  %v1708_v11 = vld [vmem:[#allocation3 + $0x18] sm:$0xff] }
 0x1b4   : > { %v1065_v14 = vrot.slane %v1064_v3, 1  ;;  %v1067_v6 = vrot.slane %v1026_v4, 4  ;;  %v2320_v15 = vsel %vm1213_vm10, %v1132_v0, %v1358_v8  ;;  %v1217_v31 = vsel %vm1205_vm5, %v1196_v23, %v1216_v13  ;;  %v1707_v17 = vld [vmem:[#allocation3 + $0x10] sm:$0xff] }
 0x1b5   : > { %v1186_v32 = vunpack.c.l.b16 %v1134_v22  ;;  %v1218_v59 = vsel %vm1207_vm6, %v1197_v34, %v1217_v31  ;;  %v1188_v42 = vunpack.c.l.b16 %v1136_v38  ;;  %v1148_v44 = vpack.c.bf16 %v1132_v0, %v1132_v0  ;;  %v1706_v22 = vld [vmem:[#allocation3 + $0x8] sm:$0xff] }
 0x1b6   : > { %v1066_v18 = vmax.f32 %v1064_v3, %v1065_v14  ;;  %v1068_v19 = vmax.f32 %v1026_v4, %v1067_v6  ;;  %v1139_v45 = vpack.c.bf16 %v1078_v33, %v1078_v33  ;;  %v1219_v49 = vsel %vm1209_vm8, %v1198_v41, %v1218_v59  ;;  %v1712_v4 = vld [vmem:[#allocation3 + $0x38] sm:$0xff] }
 0x1b7   : > { %v1202_v12 = vsel %vm1201_vm7, %v1186_v32, %v1185_v39  ;;  %v1199_v52 = vunpack.c.l.b16 %v1147_v40  ;;  %v1200_v55 = vunpack.c.l.b16 %v1148_v44  ;;  %1435 = vmatpush.bf16.msra.mxu2 %v1712_v4 }
 0x1b8   : > { %v1069_v25 = vrot.slane %v1068_v19, 2  ;;  %v1349_v26 = vsel %vm1207_vm6, %v1066_v18, %v2270_v16  ;;  %v1137_v35 = vpack.c.bf16 %v1066_v18, %v1066_v18  ;;  %v1084_v16 = vmax.f32 %v1082_v10, %v1083_v24  ;;  %v1783_v10 = vld [vmem:[%s2399_s5] ss:$0 sm:$0xff] }
 0x1b9   : > { %v1204_v51 = vsel %vm1203_vm4, %v1187_v37, %v1202_v12  ;;  %v1191_v58 = vunpack.c.l.b16 %v1139_v45  ;;  %v1220_v61 = vsel %vm1211_vm9, %v1199_v52, %v1219_v49 }
 0x1ba   : > { %v1070_v30 = vmax.f32 %v1068_v19, %v1069_v25  ;;  %v1189_v46 = vunpack.c.l.b16 %v1137_v35  ;;  %v1140_v48 = vpack.c.bf16 %v1084_v16, %v1084_v16  ;;  %v1206_v56 = vsel %vm1205_vm5, %v1188_v42, %v1204_v51 }
 0x1bb   : > { %v1221_v2 = vsel %vm1213_vm10, %v1200_v55, %v1220_v61  ;;  %1436 = vmatpush.bf16.msra.mxu2 %v1711_v5 }
 0x1bc   : > { %v1071_v36 = vrot.slane %v1070_v30, 1  ;;  %v1208_v60 = vsel %vm1207_vm6, %v1189_v46, %v1206_v56  ;;  %v1192_v62 = vunpack.c.l.b16 %v1140_v48  ;;  %v1784_v56 = vld [vmem:[%s2401_s7] ss:$0 sm:$0xff] }
 0x1be   : > { %v1072_v43 = vmax.f32 %v1070_v30, %v1071_v36 }
 0x1bf   : > { %1437 = vmatpush.bf16.msra.mxu2 %v1710_v7 }
 0x1c0   : > { %v1138_v47 = vpack.c.bf16 %v1072_v43, %v1072_v43  ;;  %v1350_v50 = vsel %vm1209_vm8, %v1072_v43, %v1349_v26 }
 0x1c1   : > { %v1351_v53 = vsel %vm1211_vm9, %v1078_v33, %v1350_v50 }
 0x1c2   : > { %v1190_v54 = vunpack.c.l.b16 %v1138_v47  ;;  %v2344_v57 = vsel %vm1213_vm10, %v1084_v16, %v1351_v53 }
 0x1c3   : > { %1438 = vmatpush.bf16.msra.mxu2 %v1709_v9 }
 0x1c4   : > { %v1210_v63 = vsel %vm1209_vm8, %v1190_v54, %v1208_v60 }
 0x1c5   : > { %v1212_v0 = vsel %vm1211_vm9, %v1191_v58, %v1210_v63 }
 0x1c6   : > { %v1214_v1 = vsel %vm1213_vm10, %v1192_v62, %v1212_v0 }
 0x1c7   : > { %v1222_v3 = vpack.c.b16 %v1221_v2, %v1214_v1  ;;  %1439 = vmatpush.bf16.msra.mxu2 %v1708_v11 }
 0x1c9   : > { %1280 = vmatmul.bf16.vlgmr.msrb.gmra.mxu1 %v1222_v3 }
 0x1cb   : > { %1440 = vmatpush.bf16.msra.mxu2 %v1707_v17 }
 0x1cf   : > { %1441 = vmatpush.bf16.msra.mxu2 %v1706_v22 }
 0x1d3   : > { %1442 = vmatpush.bf16.msra.mxu2 %v1705_v21 }
 0x246   : > { %v1281_v8 = vpop.f32.mrf.mxu1 }
 0x247   : > { %v1282_v14 = vadd.f32 %v1783_v10, %v1281_v8 }
 0x249   : > { %v1286_v6 = vsub.f32 0.0, %v1282_v14  ;;  %v1324_v46 = vmax.f32 %v1282_v14, 0.0 }
 0x24b   : > { %v1288_v18 = vmul.f32 1.442695, %v1286_v6 }
 0x24d   : > { %1785 = vpow2.f32 %v1288_v18 }
 0x24e   : > { %v1283_v19 = vpop.f32.mrf.mxu1 }
 0x24f   : > { %v1284_v20 = vadd.f32 %v1783_v10, %v1283_v19 }
 0x251   : > { %v1287_v13 = vsub.f32 0.0, %v1284_v20  ;;  %v1325_v47 = vmax.f32 %v1284_v20, 0.0 }
 0x253   : > { %v1786_v23 = vpop.eup %1785  ;;  %v1290_v24 = vmul.f32 1.442695, %v1287_v13 }
 0x254   : > { %v1292_v25 = vadd.f32 1.0, %v1786_v23 }
 0x255   : > { %1787 = vpow2.f32 %v1290_v24 }
 0x256   : > { %1789 = vrcp.f32 %v1292_v25  ;;  %v1305_v31 = vand.u32 2147483648, %v1292_v25  ;;  %vm1299_vm12 = vweird.f32 %v1292_v25  ;;  %v1303_v33 = vand.u32 2147483647, %v1292_v25 }
 0x258   : > { %v1306_v36 = vor.u32 1.1754944e-38, %v1305_v31  ;;  %vm1304_vm14 = vcmp.eq.f32.partialorder %v1303_v33, 8.507059e+37 }
 0x25b   : > { %v1788_v26 = vpop.eup %1787 }
 0x25c   : > { %v1790_v27 = vpop.eup %1789  ;;  %v1293_v28 = vadd.f32 1.0, %v1788_v26 }
 0x25d   : > { %v1295_v29 = vmul.f32 %v1790_v27, %v1292_v25  ;;  %vm1300_vm11 = vweird.f32 %v1790_v27 }
 0x25e   : > { %1791 = vrcp.f32 %v1293_v28  ;;  %vm1301_vm13 = vmor %vm1299_vm12, %vm1300_vm11  ;;  %v1320_v40 = vand.u32 2147483648, %v1293_v28  ;;  %v1318_v41 = vand.u32 2147483647, %v1293_v28  ;;  %vm1314_vm0 = vweird.f32 %v1293_v28 }
 0x25f   : > { %v1296_v38 = vsub.f32 1.0, %v1295_v29 }
 0x260   : > { %v1321_v44 = vor.u32 1.1754944e-38, %v1320_v40  ;;  %vm1319_vm2 = vcmp.eq.f32.partialorder %v1318_v41, 8.507059e+37 }
 0x261   : > { %v1297_v30 = vmul.f32 %v1790_v27, %v1296_v38 }
 0x263   : > { %v1298_v32 = vadd.f32 %v1790_v27, %v1297_v30 }
 0x264   : > { %v1792_v34 = vpop.eup %1791 }
 0x265   : > { %v1302_v35 = vsel %vm1301_vm13, %v1790_v27, %v1298_v32  ;;  %v1310_v16 = vmul.f32 %v1792_v34, %v1293_v28  ;;  %vm1315_vm15 = vweird.f32 %v1792_v34 }
 0x266   : > { %v1307_v37 = vsel %vm1304_vm14, %v1306_v36, %v1302_v35  ;;  %vm1316_vm1 = vmor %vm1314_vm0, %vm1315_vm15 }
 0x267   : > { %v1311_v39 = vsub.f32 1.0, %v1310_v16  ;;  %v1328_v42 = vsub.f32 1.0, %v1307_v37  ;;  %v1326_v50 = vmul.f32 %v1324_v46, %v1307_v37 }
 0x269   : > { %v1312_v59 = vmul.f32 %v1792_v34, %v1311_v39  ;;  %v1362_v49 = vmul.f32 %v2344_v57, %v1328_v42 }
 0x26b   : > { %v1313_v43 = vadd.f32 %v1792_v34, %v1312_v59  ;;  %v1364_v53 = vadd.f32 %v1362_v49, %v1326_v50 }
 0x26d   : > { %v1317_v12 = vsel %vm1316_vm1, %v1792_v34, %v1313_v43 }
 0x26e   : > { %v1322_v45 = vsel %vm1319_vm2, %v1321_v44, %v1317_v12 }
 0x26f   : > { %v1329_v48 = vsub.f32 1.0, %v1322_v45  ;;  %v1327_v51 = vmul.f32 %v1325_v47, %v1322_v45 }
 0x271   : > { %v1363_v52 = vmul.f32 %v2320_v15, %v1329_v48 }
 0x273   : > { %v1365_v54 = vadd.f32 %v1363_v52, %v1327_v51 }
 0x275   : > { %v1366_v55 = vpack.c.bf16 %v1365_v54, %v1364_v53 }
 0x277   : > { %1443 = vmatmul.bf16.vlgmr.msra.gmra.mxu2 %v1366_v55 }
 0x2fa   : > { %v1444_v58 = vpop.f32.mrf.mxu2 }
 0x2fb   : > { %v1445_v60 = vadd.f32 %v1784_v56, %v1444_v58 }
 0x2fd   : > { %1449 = vmax.xlane.f32.xlu0 %v1445_v60 }
 0x302   : > { %v1446_v61 = vpop.f32.mrf.mxu2 }
 0x303   : > { %v1447_v62 = vadd.f32 %v1784_v56, %v1446_v61 }
 0x305   : > { %1451 = vmax.xlane.f32.xlu1 %v1447_v62 }
 0x370   : > { %v1450_v63 = vpop.xlane.xlu0 %1449 }
 0x371   : > { %v1453_v57 = vsub.f32 %v1445_v60, %v1450_v63 }
 0x373   : > { %v1455_v0 = vmul.f32 1.442695, %v1453_v57 }
 0x375   : > { %1793 = vpow2.f32 %v1455_v0 }
 0x378   : > { %v1452_v1 = vpop.xlane.xlu1 %1451 }
 0x379   : > { %v1454_v15 = vsub.f32 %v1447_v62, %v1452_v1 }
 0x37b   : > { %v1794_v2 = vpop.eup %1793  ;;  %v1457_v3 = vmul.f32 1.442695, %v1454_v15 }
 0x37c   : > { %1459 = vadd.xlane.f32.xlu2 %v1794_v2 }
 0x37d   : > { %1795 = vpow2.f32 %v1457_v3 }
 0x383   : > { %v1796_v4 = vpop.eup %1795 }
 0x384   : > { %1461 = vadd.xlane.f32.xlu2 %v1796_v4 }
 0x3ef   : > { %v1460_v5 = vpop.xlane.xlu2 %1459 }
 0x3f0   : > { %1797 = vrcp.f32 %v1460_v5  ;;  %v1474_v11 = vand.u32 2147483648, %v1460_v5  ;;  %v1472_v6 = vand.u32 2147483647, %v1460_v5  ;;  %vm1468_vm7 = vweird.f32 %v1460_v5 }
 0x3f2   : > { %v1475_v19 = vor.u32 1.1754944e-38, %v1474_v11  ;;  %vm1473_vm5 = vcmp.eq.f32.partialorder %v1472_v6, 8.507059e+37 }
 0x3f6   : > { %v1798_v7 = vpop.eup %1797 }
 0x3f7   : > { %v1464_v9 = vmul.f32 %v1798_v7, %v1460_v5  ;;  %v1462_v10 = vpop.xlane.xlu2 %1461  ;;  %vm1469_vm3 = vweird.f32 %v1798_v7 }
 0x3f8   : > { %1799 = vrcp.f32 %v1462_v10  ;;  %vm1470_vm4 = vmor %vm1468_vm7, %vm1469_vm3  ;;  %v1489_v24 = vand.u32 2147483648, %v1462_v10  ;;  %v1487_v26 = vand.u32 2147483647, %v1462_v10  ;;  %vm1483_vm8 = vweird.f32 %v1462_v10 }
 0x3f9   : > { %v1465_v8 = vsub.f32 1.0, %v1464_v9 }
 0x3fa   : > { %v1490_v28 = vor.u32 1.1754944e-38, %v1489_v24  ;;  %vm1488_vm10 = vcmp.eq.f32.partialorder %v1487_v26, 8.507059e+37 }
 0x3fb   : > { %v1466_v14 = vmul.f32 %v1798_v7, %v1465_v8 }
 0x3fd   : > { %v1467_v17 = vadd.f32 %v1798_v7, %v1466_v14 }
 0x3fe   : > { %v1800_v18 = vpop.eup %1799 }
 0x3ff   : > { %v1471_v22 = vsel %vm1470_vm4, %v1798_v7, %v1467_v17  ;;  %v1479_v20 = vmul.f32 %v1800_v18, %v1462_v10  ;;  %vm1484_vm6 = vweird.f32 %v1800_v18 }
 0x400   : > { %v1476_v21 = vsel %vm1473_vm5, %v1475_v19, %v1471_v22  ;;  %vm1485_vm9 = vmor %vm1483_vm8, %vm1484_vm6 }
 0x401   : > { %v1477_v13 = vmul.f32 %v1794_v2, %v1476_v21  ;;  %v1480_v23 = vsub.f32 1.0, %v1479_v20 }
 0x403   : > { %v1481_v25 = vmul.f32 %v1800_v18, %v1480_v23  ;;  %1493 = vst [vmem:[%s376_s24] sm:$0xff] %v1477_v13 }
 0x405   : > { %v1482_v27 = vadd.f32 %v1800_v18, %v1481_v25 }
 0x407   : > { %v1486_v29 = vsel %vm1485_vm9, %v1800_v18, %v1482_v27 }
 0x408   : > { %v1491_v38 = vsel %vm1488_vm10, %v1490_v28, %v1486_v29 }
 0x409   : > { %v1492_v30 = vmul.f32 %v1796_v4, %v1491_v38 }
 0x40b   : > { %1494 = vst [vmem:[%s376_s24 + $0x8] sm:$0xff] %v1492_v30 }
 0x40c   : > { %1858 = shalt.err (!%p1855_p9)
}
 0x40d   : > { %s1903_s15 = smov 128   ;;  %s1904_s23 = smov 8  }
 0x40e   : > { %1728 = dma.vmem_to_hbm [thread:$0]  (%p1993_p6), %s1509_s25, 256, %s1511_s26, %s1496_s9, %s1903_s15, %s1903_s15, %s1904_s23  }
 0x40f PF: > { %s1525_s18 = sand.u32 1, %s1885_s27   ;;  %p1735_p11 = pnand %p1594_p1, %p1999_p10 }
 0x410   : > { %s1526_s24 = scalar_lea.sflag [#allocation5], %s1525_s18 }
 0x411   : > { %p1736_p12 = pneg %p1735_p11 }
 0x413   : > { %1880 = dma.done.wait (%p1736_p12), %s1526_s24, 256  }
 0x414   : > { %1882 = vsyncadd (%p1736_p12), %s1526_s24, 4294967040  ;;  %p19_p13 = scmp.ge.s32.totalorder %s1975_s11, 4   ;;  %s2407_s27 = smov %s1889_s28 }
 0x415   : > { %s2408_s28 = smov %s1893_s29  ;;  %s2409_s29 = smov %s1987_s14 }
 0x416   : > { %s2410_s30 = smov %s1975_s11  ;;  %21 = sbr.rel (!%p19_p13) target bundleno = 4 (0x4), region = 137 }
 0x41b   :  { %1532 = vsyncpa [#allocation4], 1 }
 0x41c   :  { %1534 = vsyncpa [#allocation4 + $0x1], 1 }
 0x41d   :  { %1535 = vsyncpa [#allocation5], 1 }
 0x41e   :  { %1537 = vsyncpa [#allocation5 + $0x1], 1 }

</bundles_post_ra>
